<compile_context>
chip_gen: v7x
topology: tpu7x:2x2x1
jax: 0.10.0
libtpu: 0.0.40
codegen_flags: <defaults>
</compile_context>

<pallas_src>
import functools

import jax
import jax.numpy as jnp
from jax import lax
from jax.experimental import pallas as pl
from jax.experimental.pallas import tpu as pltpu


def _layernorm(x, gamma, beta, eps=1e-5):
    mu = jnp.mean(x, axis=-1, keepdims=True)
    var = jnp.mean(jnp.square(x - mu), axis=-1, keepdims=True)
    return (x - mu) * lax.rsqrt(var + eps) * gamma + beta


def _allset_block(x, mask01, kw, vw, q2t, w1, w2, smalls, headsel):
    """One AllSetTransformerBlock (single query per head) + the layer-level ReLU.

    x       : [Ns, Cin]   source-cell features
    mask01  : [Nt, Ns]    0/1 incidence pattern (float32)
    kw, vw  : [Cin, hid]  K/V projections, hidden index = h*cpp + c (head-major)
    q2t     : [hid, H]    block-diagonal single-query weights (alpha = xk @ q2t)
    smalls  : [8, hid]    rows: q_skip, ln0_g, ln0_b, b1, b2, ln1_g, ln1_b, pad
    headsel : [H, hid]    0/1 column selector, headsel[h, j] = (j // cpp == h)
    """
    qflat = smalls[0:1, :]
    ln0_g, ln0_b = smalls[1:2, :], smalls[2:3, :]
    b1, b2 = smalls[3:4, :], smalls[4:5, :]
    ln1_g, ln1_b = smalls[5:6, :], smalls[6:7, :]

    # K/V projections for all heads at once.
    xk = jnp.dot(x, kw, preferred_element_type=jnp.float32)            # [Ns, hid]
    xv = jnp.dot(x, vw, preferred_element_type=jnp.float32)            # [Ns, hid]

    # Single-query attention logits per head: alpha[s, h] = <Q_h, xk_h[s, :]>.
    alpha = jnp.dot(xk, q2t, preferred_element_type=jnp.float32)       # [Ns, H]

    # Sparse softmax over incident sources, ALL heads at once, written as
    # incidence matmuls.  Shift by the per-head global max (softmax is shift
    # invariant, so this is exact); p in (0, 1].
    p = jnp.exp(alpha - jnp.max(alpha, axis=0, keepdims=True))         # [Ns, H]
    p_cols = jnp.dot(p, headsel, preferred_element_type=jnp.float32)   # [Ns, hid]
    num = jnp.dot(mask01, p_cols * xv,
                  preferred_element_type=jnp.float32)                  # [Nt, hid]
    den = jnp.dot(mask01, p_cols, preferred_element_type=jnp.float32)  # [Nt, hid]
    # Targets with no incident source get zero attention output (den == 0 guard),
    # matching torch.sparse.softmax semantics.
    att = num * pl.reciprocal(jnp.where(den > 0.0, den, 1.0), approx=True)

    # Q-weight skip + LN0, MLP (Linear-ReLU-Linear) with ReLU residual + LN1,
    # followed by the layer-level ReLU.  Dropouts are identity at inference.
    y0 = _layernorm(att + qflat, ln0_g, ln0_b)
    h1 = jnp.maximum(jnp.dot(y0, w1, preferred_element_type=jnp.float32) + b1, 0.0)
    h2 = jnp.dot(h1, w2, preferred_element_type=jnp.float32) + b2
    z = _layernorm(y0 + jnp.maximum(h2, 0.0), ln1_g, ln1_b)
    return jnp.maximum(z, 0.0)


def fused_forward_kernel(x0_ref, mask_v2e_ref, mask_e2v_ref, headsel_ref,
                         kw0_ref, vw0_ref, kw_r_ref, vw_r_ref, q2t_ref,
                         w1_ref, w2_ref, smalls_ref, lin_w_ref, lin_b_ref,
                         out_ref, *, n_blocks):
    """Entire AllSetTransformer forward (all blocks + pooling head) in one kernel."""
    headsel = headsel_ref[...]
    mask_v2e = mask_v2e_ref[...]            # [E, N]  (targets = edges)
    mask_e2v = mask_e2v_ref[...]            # [N, E]  (targets = nodes)
    x = x0_ref[...].astype(jnp.float32)

    for b in range(n_blocks):               # static unroll: weights differ per block
        mask01 = mask_v2e if b % 2 == 0 else mask_e2v
        kw = kw0_ref[...] if b == 0 else kw_r_ref[b - 1]
        vw = vw0_ref[...] if b == 0 else vw_r_ref[b - 1]
        x = _allset_block(x, mask01, kw, vw, q2t_ref[b], w1_ref[b], w2_ref[b],
                          smalls_ref[b], headsel)

    # Fused pooling head: max over cells -> Linear -> sigmoid.
    pooled = jnp.max(x, axis=0, keepdims=True)                          # [1, hid]
    logit = jnp.dot(pooled, lin_w_ref[...],
                    preferred_element_type=jnp.float32) + lin_b_ref[...]
    out_ref[...] = 1.0 / (1.0 + jnp.exp(-logit))


def allset_transformer_forward(x_0, incidence_1, params):
    """x_0: [N, in_ch] node features; incidence_1: [N, E] node-edge incidence."""
    # Incidence pattern as 0/1 matmul operands (built once, shared by all layers).
    mask_v2e = (incidence_1.T != 0).astype(jnp.float32)   # [E, N]
    mask_e2v = (incidence_1 != 0).astype(jnp.float32)     # [N, E]

    n_blocks = params["w1"].shape[0]
    out_ch = params["lin_w"].shape[1]

    args = (x_0.astype(jnp.float32), mask_v2e, mask_e2v, params["headsel"],
            params["kw0"], params["vw0"], params["kw_r"], params["vw_r"],
            params["q2t"], params["w1"], params["w2"], params["smalls"],
            params["lin_w"], params["lin_b"])
    kern = functools.partial(fused_forward_kernel, n_blocks=n_blocks)
    out = pl.pallas_call(
        kern,
        out_shape=jax.ShapeDtypeStruct((1, out_ch), jnp.float32),
        in_specs=[pl.BlockSpec(memory_space=pltpu.MemorySpace.VMEM)] * len(args),
        out_specs=pl.BlockSpec(memory_space=pltpu.MemorySpace.VMEM),
    )(*args)
    return out[0, 0]                       # sigmoid(linear(max-pool(x_0)))[0]


# ----------------------------- parameters ----------------------------------


def init_block_params(key, in_ch, hid, heads):
    cpp = hid // heads
    ks = jax.random.split(key, 5)
    scale_k = 1.0 / jnp.sqrt(jnp.float32(in_ch))
    K = jax.random.normal(ks[0], (heads, in_ch, cpp), jnp.float32) * scale_k
    Q = jax.random.normal(ks[1], (heads, 1, cpp), jnp.float32) * 0.1
    V = jax.random.normal(ks[2], (heads, in_ch, cpp), jnp.float32) * scale_k
    # Head-major flattening (hidden index = h*cpp + c), matching the block's
    # permute(0, 2, 1, 3).reshape(...) layout.
    kw = jnp.transpose(K, (1, 0, 2)).reshape(in_ch, hid)
    vw = jnp.transpose(V, (1, 0, 2)).reshape(in_ch, hid)
    qflat = Q.reshape(1, hid)
    # Block-diagonal query weights, stored transposed so alpha = xk @ q2t.
    blocksel = jnp.repeat(jnp.eye(heads, dtype=jnp.float32), cpp, axis=0)  # [hid, H]
    q2t = blocksel * qflat.reshape(hid, 1)
    scale_h = 1.0 / jnp.sqrt(jnp.float32(hid))
    w1 = jax.random.normal(ks[3], (hid, hid), jnp.float32) * scale_h
    w2 = jax.random.normal(ks[4], (hid, hid), jnp.float32) * scale_h
    z = jnp.zeros((1, hid), jnp.float32)
    o = jnp.ones((1, hid), jnp.float32)
    # Packed small vectors: q_skip, ln0_g, ln0_b, b1, b2, ln1_g, ln1_b, pad.
    smalls = jnp.concatenate([qflat, o, z, z, z, o, z, z], axis=0)     # [8, hid]
    return {"kw": kw, "vw": vw, "q2t": q2t, "w1": w1, "w2": w2, "smalls": smalls}


def init_model_params(key, in_ch, hid, out_ch, heads, n_layers):
    n_blocks = 2 * n_layers            # each layer = vertex2edge + edge2vertex block
    keys = jax.random.split(key, n_blocks + 1)
    blocks = []
    c = in_ch
    for b in range(n_blocks):
        blocks.append(init_block_params(keys[b], c, hid, heads))
        c = hid
    cpp = hid // heads
    return {
        "kw0": blocks[0]["kw"], "vw0": blocks[0]["vw"],                 # [in_ch, hid]
        "kw_r": jnp.stack([blk["kw"] for blk in blocks[1:]]),           # [n_blocks-1, hid, hid]
        "vw_r": jnp.stack([blk["vw"] for blk in blocks[1:]]),
        "q2t": jnp.stack([blk["q2t"] for blk in blocks]),               # [n_blocks, hid, H]
        "w1": jnp.stack([blk["w1"] for blk in blocks]),                 # [n_blocks, hid, hid]
        "w2": jnp.stack([blk["w2"] for blk in blocks]),
        "smalls": jnp.stack([blk["smalls"] for blk in blocks]),         # [n_blocks, 8, hid]
        "headsel": jnp.repeat(jnp.eye(heads, dtype=jnp.float32), cpp, axis=1),  # [H, hid]
        "lin_w": jax.random.normal(keys[-1], (hid, out_ch), jnp.float32)
                 / jnp.sqrt(jnp.float32(hid)),
        "lin_b": jnp.zeros((1, out_ch), jnp.float32),
    }


# --------------------------- pure-JAX reference ------------------------------


def _reference_forward(x_0, incidence_1, params):
    """Per-head, per-row-max masked softmax reference (validation only)."""
    heads, hid = params["headsel"].shape
    cpp = hid // heads
    n_blocks = params["w1"].shape[0]
    mask_v2e = incidence_1.T != 0
    mask_e2v = incidence_1 != 0
    x = x_0.astype(jnp.float32)
    for b in range(n_blocks):
        mask = mask_v2e if b % 2 == 0 else mask_e2v
        kw = params["kw0"] if b == 0 else params["kw_r"][b - 1]
        vw = params["vw0"] if b == 0 else params["vw_r"][b - 1]
        q2t, w1, w2 = params["q2t"][b], params["w1"][b], params["w2"][b]
        sm = params["smalls"][b]
        qflat, ln0_g, ln0_b = sm[0:1], sm[1:2], sm[2:3]
        b1, b2, ln1_g, ln1_b = sm[3:4], sm[4:5], sm[5:6], sm[6:7]
        nt = mask.shape[0]
        xk, xv = x @ kw, x @ vw
        alpha = xk @ q2t                                                 # [Ns, H]
        logits = jnp.where(mask[None, :, :], alpha.T[:, None, :], -1e30)  # [H, Nt, Ns]
        m = jnp.max(logits, axis=-1, keepdims=True)
        e = jnp.where(mask[None, :, :], jnp.exp(logits - m), 0.0)
        d = jnp.sum(e, axis=-1, keepdims=True)
        w = e / jnp.where(d > 0.0, d, 1.0)                               # [H, Nt, Ns]
        att = jnp.einsum("hts,shc->thc", w,
                         xv.reshape(-1, heads, cpp)).reshape(nt, hid)
        y0 = _layernorm(att + qflat, ln0_g, ln0_b)
        h1 = jnp.maximum(y0 @ w1 + b1, 0.0)
        h2 = h1 @ w2 + b2
        x = jnp.maximum(_layernorm(y0 + jnp.maximum(h2, 0.0), ln1_g, ln1_b), 0.0)
    pooled = jnp.max(x, axis=0, keepdims=True)
    return jax.nn.sigmoid(pooled @ params["lin_w"] + params["lin_b"])[0, 0]


# ------------------------------- demo ----------------------------------------


if __name__ == "__main__":
    N_NODES, N_EDGES = 12, 6
    IN_CH, HID_CH, OUT_CH = 8, 32, 4
    HEADS, N_LAYERS = 4, 2

    key = jax.random.PRNGKey(0)
    k_x, k_inc, k_p = jax.random.split(key, 3)

    x_0 = jax.random.normal(k_x, (N_NODES, IN_CH), jnp.float32)
    incidence_1 = (jax.random.uniform(k_inc, (N_NODES, N_EDGES)) < 0.4).astype(jnp.float32)
    # every node in at least one hyperedge, every hyperedge nonempty
    incidence_1 = incidence_1.at[jnp.arange(N_NODES), jnp.arange(N_NODES) % N_EDGES].set(1.0)

    params = init_model_params(k_p, IN_CH, HID_CH, OUT_CH, HEADS, N_LAYERS)

    fwd = jax.jit(allset_transformer_forward)
    y = fwd(x_0, incidence_1, params)
    y = jax.block_until_ready(y)

    y_ref = _reference_forward(x_0, incidence_1, params)
    assert y.shape == () and bool(jnp.isfinite(y)), y
    assert abs(float(y) - float(y_ref)) < 5e-2, (float(y), float(y_ref))
    print("KERNEL_OK")
</pallas_src>

<mosaic_0001>
module attributes {stable_mosaic.version = 11 : i64} {
  func.func @fused_forward_kernel(%arg0: memref<12x8xf32, #tpu.memory_space<vmem>>, %arg1: memref<6x12xf32, #tpu.memory_space<vmem>>, %arg2: memref<12x6xf32, #tpu.memory_space<vmem>>, %arg3: memref<4x32xf32, #tpu.memory_space<vmem>>, %arg4: memref<8x32xf32, #tpu.memory_space<vmem>>, %arg5: memref<8x32xf32, #tpu.memory_space<vmem>>, %arg6: memref<3x32x32xf32, #tpu.memory_space<vmem>>, %arg7: memref<3x32x32xf32, #tpu.memory_space<vmem>>, %arg8: memref<4x32x4xf32, #tpu.memory_space<vmem>>, %arg9: memref<4x32x32xf32, #tpu.memory_space<vmem>>, %arg10: memref<4x32x32xf32, #tpu.memory_space<vmem>>, %arg11: memref<4x8x32xf32, #tpu.memory_space<vmem>>, %arg12: memref<32x4xf32, #tpu.memory_space<vmem>>, %arg13: memref<1x4xf32, #tpu.memory_space<vmem>>, %arg14: memref<1x4xf32, #tpu.memory_space<vmem>>) attributes {dimension_semantics = [], scalar_prefetch = 0 : i64, scratch_operands = 0 : i64, tpu.core_type = #tpu.core_type<tc>} {
    %c0 = arith.constant 0 : index
    %c0_0 = arith.constant 0 : index
    %0 = vector.load %arg3[%c0, %c0_0] : memref<4x32xf32, #tpu.memory_space<vmem>>, vector<4x32xf32>
    %c0_1 = arith.constant 0 : index
    %c0_2 = arith.constant 0 : index
    %1 = vector.load %arg1[%c0_1, %c0_2] : memref<6x12xf32, #tpu.memory_space<vmem>>, vector<6x12xf32>
    %c0_3 = arith.constant 0 : index
    %c0_4 = arith.constant 0 : index
    %2 = vector.load %arg2[%c0_3, %c0_4] : memref<12x6xf32, #tpu.memory_space<vmem>>, vector<12x6xf32>
    %c0_5 = arith.constant 0 : index
    %c0_6 = arith.constant 0 : index
    %3 = vector.load %arg0[%c0_5, %c0_6] : memref<12x8xf32, #tpu.memory_space<vmem>>, vector<12x8xf32>
    %c0_7 = arith.constant 0 : index
    %c0_8 = arith.constant 0 : index
    %4 = vector.load %arg4[%c0_7, %c0_8] : memref<8x32xf32, #tpu.memory_space<vmem>>, vector<8x32xf32>
    %c0_9 = arith.constant 0 : index
    %c0_10 = arith.constant 0 : index
    %5 = vector.load %arg5[%c0_9, %c0_10] : memref<8x32xf32, #tpu.memory_space<vmem>>, vector<8x32xf32>
    %c0_11 = arith.constant 0 : index
    %c0_12 = arith.constant 0 : index
    %c0_13 = arith.constant 0 : index
    %6 = vector.load %arg8[%c0_11, %c0_12, %c0_13] : memref<4x32x4xf32, #tpu.memory_space<vmem>>, vector<1x32x4xf32>
    %7 = vector.shape_cast %6 : vector<1x32x4xf32> to vector<32x4xf32>
    %c0_14 = arith.constant 0 : index
    %c0_15 = arith.constant 0 : index
    %c0_16 = arith.constant 0 : index
    %8 = vector.load %arg9[%c0_14, %c0_15, %c0_16] : memref<4x32x32xf32, #tpu.memory_space<vmem>>, vector<1x32x32xf32>
    %9 = vector.shape_cast %8 : vector<1x32x32xf32> to vector<32x32xf32>
    %c0_17 = arith.constant 0 : index
    %c0_18 = arith.constant 0 : index
    %c0_19 = arith.constant 0 : index
    %10 = vector.load %arg10[%c0_17, %c0_18, %c0_19] : memref<4x32x32xf32, #tpu.memory_space<vmem>>, vector<1x32x32xf32>
    %11 = vector.shape_cast %10 : vector<1x32x32xf32> to vector<32x32xf32>
    %c0_20 = arith.constant 0 : index
    %c0_21 = arith.constant 0 : index
    %c0_22 = arith.constant 0 : index
    %12 = vector.load %arg11[%c0_20, %c0_21, %c0_22] : memref<4x8x32xf32, #tpu.memory_space<vmem>>, vector<1x8x32xf32>
    %13 = vector.shape_cast %12 : vector<1x8x32xf32> to vector<8x32xf32>
    %14 = vector.extract_strided_slice %13 {offsets = [0, 0], sizes = [1, 32], strides = [1, 1]} : vector<8x32xf32> to vector<1x32xf32>
    %15 = vector.extract_strided_slice %13 {offsets = [1, 0], sizes = [1, 32], strides = [1, 1]} : vector<8x32xf32> to vector<1x32xf32>
    %16 = vector.extract_strided_slice %13 {offsets = [2, 0], sizes = [1, 32], strides = [1, 1]} : vector<8x32xf32> to vector<1x32xf32>
    %17 = vector.extract_strided_slice %13 {offsets = [3, 0], sizes = [1, 32], strides = [1, 1]} : vector<8x32xf32> to vector<1x32xf32>
    %18 = vector.extract_strided_slice %13 {offsets = [4, 0], sizes = [1, 32], strides = [1, 1]} : vector<8x32xf32> to vector<1x32xf32>
    %19 = vector.extract_strided_slice %13 {offsets = [5, 0], sizes = [1, 32], strides = [1, 1]} : vector<8x32xf32> to vector<1x32xf32>
    %20 = vector.extract_strided_slice %13 {offsets = [6, 0], sizes = [1, 32], strides = [1, 1]} : vector<8x32xf32> to vector<1x32xf32>
    %cst = arith.constant dense<0.000000e+00> : vector<12x32xf32>
    %21 = tpu.matmul %3, %4, %cst {dimension_numbers = #tpu.dot_dimension_numbers<[1], [0], [0], [1], [0, 0, 1, 1], [], []>} : vector<12x8xf32>, vector<8x32xf32>, vector<12x32xf32> -> vector<12x32xf32>
    %cst_23 = arith.constant dense<0.000000e+00> : vector<12x32xf32>
    %22 = tpu.matmul %3, %5, %cst_23 {dimension_numbers = #tpu.dot_dimension_numbers<[1], [0], [0], [1], [0, 0, 1, 1], [], []>} : vector<12x8xf32>, vector<8x32xf32>, vector<12x32xf32> -> vector<12x32xf32>
    %cst_24 = arith.constant dense<0.000000e+00> : vector<12x4xf32>
    %23 = tpu.matmul %21, %7, %cst_24 {dimension_numbers = #tpu.dot_dimension_numbers<[1], [0], [0], [1], [0, 0, 1, 1], [], []>} : vector<12x32xf32>, vector<32x4xf32>, vector<12x4xf32> -> vector<12x4xf32>
    %cst_25 = arith.constant dense<0xFF800000> : vector<4xf32>
    %24 = vector.multi_reduction <maximumf>, %23, %cst_25 [0] : vector<12x4xf32> to vector<4xf32>
    %25 = vector.shape_cast %24 : vector<4xf32> to vector<1x4xf32>
    %26 = vector.broadcast %25 : vector<1x4xf32> to vector<12x4xf32>
    %27 = arith.subf %23, %26 : vector<12x4xf32>
    %28 = math.exp %27 : vector<12x4xf32>
    %cst_26 = arith.constant dense<0.000000e+00> : vector<12x32xf32>
    %29 = tpu.matmul %28, %0, %cst_26 {dimension_numbers = #tpu.dot_dimension_numbers<[1], [0], [0], [1], [0, 0, 1, 1], [], []>} : vector<12x4xf32>, vector<4x32xf32>, vector<12x32xf32> -> vector<12x32xf32>
    %30 = arith.mulf %29, %22 : vector<12x32xf32>
    %cst_27 = arith.constant dense<0.000000e+00> : vector<6x32xf32>
    %31 = tpu.matmul %1, %30, %cst_27 {dimension_numbers = #tpu.dot_dimension_numbers<[1], [0], [0], [1], [0, 0, 1, 1], [], []>} : vector<6x12xf32>, vector<12x32xf32>, vector<6x32xf32> -> vector<6x32xf32>
    %cst_28 = arith.constant dense<0.000000e+00> : vector<6x32xf32>
    %32 = tpu.matmul %1, %29, %cst_28 {dimension_numbers = #tpu.dot_dimension_numbers<[1], [0], [0], [1], [0, 0, 1, 1], [], []>} : vector<6x12xf32>, vector<12x32xf32>, vector<6x32xf32> -> vector<6x32xf32>
    %cst_29 = arith.constant 0.000000e+00 : f32
    %33 = vector.broadcast %cst_29 : f32 to vector<6x32xf32>
    %34 = arith.cmpf ogt, %32, %33 : vector<6x32xf32>
    %cst_30 = arith.constant 1.000000e+00 : f32
    %35 = vector.broadcast %cst_30 : f32 to vector<6x32xf32>
    %36 = arith.select %34, %32, %35 : vector<6x32xi1>, vector<6x32xf32>
    %37 = tpu.reciprocal %36 {approx = true} : vector<6x32xf32> -> vector<6x32xf32>
    %38 = arith.mulf %31, %37 : vector<6x32xf32>
    %39 = vector.broadcast %14 : vector<1x32xf32> to vector<6x32xf32>
    %40 = arith.addf %38, %39 : vector<6x32xf32>
    %cst_31 = arith.constant dense<0.000000e+00> : vector<6xf32>
    %41 = vector.multi_reduction <add>, %40, %cst_31 [1] : vector<6x32xf32> to vector<6xf32>
    %42 = vector.shape_cast %41 : vector<6xf32> to vector<6x1xf32>
    %cst_32 = arith.constant 3.200000e+01 : f32
    %43 = vector.broadcast %cst_32 : f32 to vector<6x1xf32>
    %44 = arith.divf %42, %43 : vector<6x1xf32>
    %45 = vector.broadcast %44 : vector<6x1xf32> to vector<6x32xf32>
    %46 = arith.subf %40, %45 : vector<6x32xf32>
    %47 = arith.mulf %46, %46 : vector<6x32xf32>
    %cst_33 = arith.constant dense<0.000000e+00> : vector<6xf32>
    %48 = vector.multi_reduction <add>, %47, %cst_33 [1] : vector<6x32xf32> to vector<6xf32>
    %49 = vector.shape_cast %48 : vector<6xf32> to vector<6x1xf32>
    %cst_34 = arith.constant 3.200000e+01 : f32
    %50 = vector.broadcast %cst_34 : f32 to vector<6x1xf32>
    %51 = arith.divf %49, %50 : vector<6x1xf32>
    %52 = vector.broadcast %44 : vector<6x1xf32> to vector<6x32xf32>
    %53 = arith.subf %40, %52 : vector<6x32xf32>
    %cst_35 = arith.constant 9.99999974E-6 : f32
    %54 = vector.broadcast %cst_35 : f32 to vector<6x1xf32>
    %55 = arith.addf %51, %54 : vector<6x1xf32>
    %56 = math.rsqrt %55 : vector<6x1xf32>
    %57 = vector.broadcast %56 : vector<6x1xf32> to vector<6x32xf32>
    %58 = arith.mulf %53, %57 : vector<6x32xf32>
    %59 = vector.broadcast %15 : vector<1x32xf32> to vector<6x32xf32>
    %60 = arith.mulf %58, %59 : vector<6x32xf32>
    %61 = vector.broadcast %16 : vector<1x32xf32> to vector<6x32xf32>
    %62 = arith.addf %60, %61 : vector<6x32xf32>
    %cst_36 = arith.constant dense<0.000000e+00> : vector<6x32xf32>
    %63 = tpu.matmul %62, %9, %cst_36 {dimension_numbers = #tpu.dot_dimension_numbers<[1], [0], [0], [1], [0, 0, 1, 1], [], []>} : vector<6x32xf32>, vector<32x32xf32>, vector<6x32xf32> -> vector<6x32xf32>
    %64 = vector.broadcast %17 : vector<1x32xf32> to vector<6x32xf32>
    %65 = arith.addf %63, %64 : vector<6x32xf32>
    %cst_37 = arith.constant 0.000000e+00 : f32
    %66 = vector.broadcast %cst_37 : f32 to vector<6x32xf32>
    %67 = arith.maximumf %65, %66 : vector<6x32xf32>
    %cst_38 = arith.constant dense<0.000000e+00> : vector<6x32xf32>
    %68 = tpu.matmul %67, %11, %cst_38 {dimension_numbers = #tpu.dot_dimension_numbers<[1], [0], [0], [1], [0, 0, 1, 1], [], []>} : vector<6x32xf32>, vector<32x32xf32>, vector<6x32xf32> -> vector<6x32xf32>
    %69 = vector.broadcast %18 : vector<1x32xf32> to vector<6x32xf32>
    %70 = arith.addf %68, %69 : vector<6x32xf32>
    %cst_39 = arith.constant 0.000000e+00 : f32
    %71 = vector.broadcast %cst_39 : f32 to vector<6x32xf32>
    %72 = arith.maximumf %70, %71 : vector<6x32xf32>
    %73 = arith.addf %62, %72 : vector<6x32xf32>
    %cst_40 = arith.constant dense<0.000000e+00> : vector<6xf32>
    %74 = vector.multi_reduction <add>, %73, %cst_40 [1] : vector<6x32xf32> to vector<6xf32>
    %75 = vector.shape_cast %74 : vector<6xf32> to vector<6x1xf32>
    %cst_41 = arith.constant 3.200000e+01 : f32
    %76 = vector.broadcast %cst_41 : f32 to vector<6x1xf32>
    %77 = arith.divf %75, %76 : vector<6x1xf32>
    %78 = vector.broadcast %77 : vector<6x1xf32> to vector<6x32xf32>
    %79 = arith.subf %73, %78 : vector<6x32xf32>
    %80 = arith.mulf %79, %79 : vector<6x32xf32>
    %cst_42 = arith.constant dense<0.000000e+00> : vector<6xf32>
    %81 = vector.multi_reduction <add>, %80, %cst_42 [1] : vector<6x32xf32> to vector<6xf32>
    %82 = vector.shape_cast %81 : vector<6xf32> to vector<6x1xf32>
    %cst_43 = arith.constant 3.200000e+01 : f32
    %83 = vector.broadcast %cst_43 : f32 to vector<6x1xf32>
    %84 = arith.divf %82, %83 : vector<6x1xf32>
    %85 = vector.broadcast %77 : vector<6x1xf32> to vector<6x32xf32>
    %86 = arith.subf %73, %85 : vector<6x32xf32>
    %cst_44 = arith.constant 9.99999974E-6 : f32
    %87 = vector.broadcast %cst_44 : f32 to vector<6x1xf32>
    %88 = arith.addf %84, %87 : vector<6x1xf32>
    %89 = math.rsqrt %88 : vector<6x1xf32>
    %90 = vector.broadcast %89 : vector<6x1xf32> to vector<6x32xf32>
    %91 = arith.mulf %86, %90 : vector<6x32xf32>
    %92 = vector.broadcast %19 : vector<1x32xf32> to vector<6x32xf32>
    %93 = arith.mulf %91, %92 : vector<6x32xf32>
    %94 = vector.broadcast %20 : vector<1x32xf32> to vector<6x32xf32>
    %95 = arith.addf %93, %94 : vector<6x32xf32>
    %cst_45 = arith.constant 0.000000e+00 : f32
    %96 = vector.broadcast %cst_45 : f32 to vector<6x32xf32>
    %97 = arith.maximumf %95, %96 : vector<6x32xf32>
    %c0_46 = arith.constant 0 : index
    %c0_47 = arith.constant 0 : index
    %c0_48 = arith.constant 0 : index
    %98 = vector.load %arg6[%c0_46, %c0_47, %c0_48] : memref<3x32x32xf32, #tpu.memory_space<vmem>>, vector<1x32x32xf32>
    %99 = vector.shape_cast %98 : vector<1x32x32xf32> to vector<32x32xf32>
    %c0_49 = arith.constant 0 : index
    %c0_50 = arith.constant 0 : index
    %c0_51 = arith.constant 0 : index
    %100 = vector.load %arg7[%c0_49, %c0_50, %c0_51] : memref<3x32x32xf32, #tpu.memory_space<vmem>>, vector<1x32x32xf32>
    %101 = vector.shape_cast %100 : vector<1x32x32xf32> to vector<32x32xf32>
    %c1 = arith.constant 1 : index
    %c0_52 = arith.constant 0 : index
    %c0_53 = arith.constant 0 : index
    %102 = vector.load %arg8[%c1, %c0_52, %c0_53] : memref<4x32x4xf32, #tpu.memory_space<vmem>>, vector<1x32x4xf32>
    %103 = vector.shape_cast %102 : vector<1x32x4xf32> to vector<32x4xf32>
    %c1_54 = arith.constant 1 : index
    %c0_55 = arith.constant 0 : index
    %c0_56 = arith.constant 0 : index
    %104 = vector.load %arg9[%c1_54, %c0_55, %c0_56] : memref<4x32x32xf32, #tpu.memory_space<vmem>>, vector<1x32x32xf32>
    %105 = vector.shape_cast %104 : vector<1x32x32xf32> to vector<32x32xf32>
    %c1_57 = arith.constant 1 : index
    %c0_58 = arith.constant 0 : index
    %c0_59 = arith.constant 0 : index
    %106 = vector.load %arg10[%c1_57, %c0_58, %c0_59] : memref<4x32x32xf32, #tpu.memory_space<vmem>>, vector<1x32x32xf32>
    %107 = vector.shape_cast %106 : vector<1x32x32xf32> to vector<32x32xf32>
    %c1_60 = arith.constant 1 : index
    %c0_61 = arith.constant 0 : index
    %c0_62 = arith.constant 0 : index
    %108 = vector.load %arg11[%c1_60, %c0_61, %c0_62] : memref<4x8x32xf32, #tpu.memory_space<vmem>>, vector<1x8x32xf32>
    %109 = vector.shape_cast %108 : vector<1x8x32xf32> to vector<8x32xf32>
    %110 = vector.extract_strided_slice %109 {offsets = [0, 0], sizes = [1, 32], strides = [1, 1]} : vector<8x32xf32> to vector<1x32xf32>
    %111 = vector.extract_strided_slice %109 {offsets = [1, 0], sizes = [1, 32], strides = [1, 1]} : vector<8x32xf32> to vector<1x32xf32>
    %112 = vector.extract_strided_slice %109 {offsets = [2, 0], sizes = [1, 32], strides = [1, 1]} : vector<8x32xf32> to vector<1x32xf32>
    %113 = vector.extract_strided_slice %109 {offsets = [3, 0], sizes = [1, 32], strides = [1, 1]} : vector<8x32xf32> to vector<1x32xf32>
    %114 = vector.extract_strided_slice %109 {offsets = [4, 0], sizes = [1, 32], strides = [1, 1]} : vector<8x32xf32> to vector<1x32xf32>
    %115 = vector.extract_strided_slice %109 {offsets = [5, 0], sizes = [1, 32], strides = [1, 1]} : vector<8x32xf32> to vector<1x32xf32>
    %116 = vector.extract_strided_slice %109 {offsets = [6, 0], sizes = [1, 32], strides = [1, 1]} : vector<8x32xf32> to vector<1x32xf32>
    %cst_63 = arith.constant dense<0.000000e+00> : vector<6x32xf32>
    %117 = tpu.matmul %97, %99, %cst_63 {dimension_numbers = #tpu.dot_dimension_numbers<[1], [0], [0], [1], [0, 0, 1, 1], [], []>} : vector<6x32xf32>, vector<32x32xf32>, vector<6x32xf32> -> vector<6x32xf32>
    %cst_64 = arith.constant dense<0.000000e+00> : vector<6x32xf32>
    %118 = tpu.matmul %97, %101, %cst_64 {dimension_numbers = #tpu.dot_dimension_numbers<[1], [0], [0], [1], [0, 0, 1, 1], [], []>} : vector<6x32xf32>, vector<32x32xf32>, vector<6x32xf32> -> vector<6x32xf32>
    %cst_65 = arith.constant dense<0.000000e+00> : vector<6x4xf32>
    %119 = tpu.matmul %117, %103, %cst_65 {dimension_numbers = #tpu.dot_dimension_numbers<[1], [0], [0], [1], [0, 0, 1, 1], [], []>} : vector<6x32xf32>, vector<32x4xf32>, vector<6x4xf32> -> vector<6x4xf32>
    %cst_66 = arith.constant dense<0xFF800000> : vector<4xf32>
    %120 = vector.multi_reduction <maximumf>, %119, %cst_66 [0] : vector<6x4xf32> to vector<4xf32>
    %121 = vector.shape_cast %120 : vector<4xf32> to vector<1x4xf32>
    %122 = vector.broadcast %121 : vector<1x4xf32> to vector<6x4xf32>
    %123 = arith.subf %119, %122 : vector<6x4xf32>
    %124 = math.exp %123 : vector<6x4xf32>
    %cst_67 = arith.constant dense<0.000000e+00> : vector<6x32xf32>
    %125 = tpu.matmul %124, %0, %cst_67 {dimension_numbers = #tpu.dot_dimension_numbers<[1], [0], [0], [1], [0, 0, 1, 1], [], []>} : vector<6x4xf32>, vector<4x32xf32>, vector<6x32xf32> -> vector<6x32xf32>
    %126 = arith.mulf %125, %118 : vector<6x32xf32>
    %cst_68 = arith.constant dense<0.000000e+00> : vector<12x32xf32>
    %127 = tpu.matmul %2, %126, %cst_68 {dimension_numbers = #tpu.dot_dimension_numbers<[1], [0], [0], [1], [0, 0, 1, 1], [], []>} : vector<12x6xf32>, vector<6x32xf32>, vector<12x32xf32> -> vector<12x32xf32>
    %cst_69 = arith.constant dense<0.000000e+00> : vector<12x32xf32>
    %128 = tpu.matmul %2, %125, %cst_69 {dimension_numbers = #tpu.dot_dimension_numbers<[1], [0], [0], [1], [0, 0, 1, 1], [], []>} : vector<12x6xf32>, vector<6x32xf32>, vector<12x32xf32> -> vector<12x32xf32>
    %cst_70 = arith.constant 0.000000e+00 : f32
    %129 = vector.broadcast %cst_70 : f32 to vector<12x32xf32>
    %130 = arith.cmpf ogt, %128, %129 : vector<12x32xf32>
    %cst_71 = arith.constant 1.000000e+00 : f32
    %131 = vector.broadcast %cst_71 : f32 to vector<12x32xf32>
    %132 = arith.select %130, %128, %131 : vector<12x32xi1>, vector<12x32xf32>
    %133 = tpu.reciprocal %132 {approx = true} : vector<12x32xf32> -> vector<12x32xf32>
    %134 = arith.mulf %127, %133 : vector<12x32xf32>
    %135 = vector.broadcast %110 : vector<1x32xf32> to vector<12x32xf32>
    %136 = arith.addf %134, %135 : vector<12x32xf32>
    %cst_72 = arith.constant dense<0.000000e+00> : vector<12xf32>
    %137 = vector.multi_reduction <add>, %136, %cst_72 [1] : vector<12x32xf32> to vector<12xf32>
    %138 = vector.shape_cast %137 : vector<12xf32> to vector<12x1xf32>
    %cst_73 = arith.constant 3.200000e+01 : f32
    %139 = vector.broadcast %cst_73 : f32 to vector<12x1xf32>
    %140 = arith.divf %138, %139 : vector<12x1xf32>
    %141 = vector.broadcast %140 : vector<12x1xf32> to vector<12x32xf32>
    %142 = arith.subf %136, %141 : vector<12x32xf32>
    %143 = arith.mulf %142, %142 : vector<12x32xf32>
    %cst_74 = arith.constant dense<0.000000e+00> : vector<12xf32>
    %144 = vector.multi_reduction <add>, %143, %cst_74 [1] : vector<12x32xf32> to vector<12xf32>
    %145 = vector.shape_cast %144 : vector<12xf32> to vector<12x1xf32>
    %cst_75 = arith.constant 3.200000e+01 : f32
    %146 = vector.broadcast %cst_75 : f32 to vector<12x1xf32>
    %147 = arith.divf %145, %146 : vector<12x1xf32>
    %148 = vector.broadcast %140 : vector<12x1xf32> to vector<12x32xf32>
    %149 = arith.subf %136, %148 : vector<12x32xf32>
    %cst_76 = arith.constant 9.99999974E-6 : f32
    %150 = vector.broadcast %cst_76 : f32 to vector<12x1xf32>
    %151 = arith.addf %147, %150 : vector<12x1xf32>
    %152 = math.rsqrt %151 : vector<12x1xf32>
    %153 = vector.broadcast %152 : vector<12x1xf32> to vector<12x32xf32>
    %154 = arith.mulf %149, %153 : vector<12x32xf32>
    %155 = vector.broadcast %111 : vector<1x32xf32> to vector<12x32xf32>
    %156 = arith.mulf %154, %155 : vector<12x32xf32>
    %157 = vector.broadcast %112 : vector<1x32xf32> to vector<12x32xf32>
    %158 = arith.addf %156, %157 : vector<12x32xf32>
    %cst_77 = arith.constant dense<0.000000e+00> : vector<12x32xf32>
    %159 = tpu.matmul %158, %105, %cst_77 {dimension_numbers = #tpu.dot_dimension_numbers<[1], [0], [0], [1], [0, 0, 1, 1], [], []>} : vector<12x32xf32>, vector<32x32xf32>, vector<12x32xf32> -> vector<12x32xf32>
    %160 = vector.broadcast %113 : vector<1x32xf32> to vector<12x32xf32>
    %161 = arith.addf %159, %160 : vector<12x32xf32>
    %cst_78 = arith.constant 0.000000e+00 : f32
    %162 = vector.broadcast %cst_78 : f32 to vector<12x32xf32>
    %163 = arith.maximumf %161, %162 : vector<12x32xf32>
    %cst_79 = arith.constant dense<0.000000e+00> : vector<12x32xf32>
    %164 = tpu.matmul %163, %107, %cst_79 {dimension_numbers = #tpu.dot_dimension_numbers<[1], [0], [0], [1], [0, 0, 1, 1], [], []>} : vector<12x32xf32>, vector<32x32xf32>, vector<12x32xf32> -> vector<12x32xf32>
    %165 = vector.broadcast %114 : vector<1x32xf32> to vector<12x32xf32>
    %166 = arith.addf %164, %165 : vector<12x32xf32>
    %cst_80 = arith.constant 0.000000e+00 : f32
    %167 = vector.broadcast %cst_80 : f32 to vector<12x32xf32>
    %168 = arith.maximumf %166, %167 : vector<12x32xf32>
    %169 = arith.addf %158, %168 : vector<12x32xf32>
    %cst_81 = arith.constant dense<0.000000e+00> : vector<12xf32>
    %170 = vector.multi_reduction <add>, %169, %cst_81 [1] : vector<12x32xf32> to vector<12xf32>
    %171 = vector.shape_cast %170 : vector<12xf32> to vector<12x1xf32>
    %cst_82 = arith.constant 3.200000e+01 : f32
    %172 = vector.broadcast %cst_82 : f32 to vector<12x1xf32>
    %173 = arith.divf %171, %172 : vector<12x1xf32>
    %174 = vector.broadcast %173 : vector<12x1xf32> to vector<12x32xf32>
    %175 = arith.subf %169, %174 : vector<12x32xf32>
    %176 = arith.mulf %175, %175 : vector<12x32xf32>
    %cst_83 = arith.constant dense<0.000000e+00> : vector<12xf32>
    %177 = vector.multi_reduction <add>, %176, %cst_83 [1] : vector<12x32xf32> to vector<12xf32>
    %178 = vector.shape_cast %177 : vector<12xf32> to vector<12x1xf32>
    %cst_84 = arith.constant 3.200000e+01 : f32
    %179 = vector.broadcast %cst_84 : f32 to vector<12x1xf32>
    %180 = arith.divf %178, %179 : vector<12x1xf32>
    %181 = vector.broadcast %173 : vector<12x1xf32> to vector<12x32xf32>
    %182 = arith.subf %169, %181 : vector<12x32xf32>
    %cst_85 = arith.constant 9.99999974E-6 : f32
    %183 = vector.broadcast %cst_85 : f32 to vector<12x1xf32>
    %184 = arith.addf %180, %183 : vector<12x1xf32>
    %185 = math.rsqrt %184 : vector<12x1xf32>
    %186 = vector.broadcast %185 : vector<12x1xf32> to vector<12x32xf32>
    %187 = arith.mulf %182, %186 : vector<12x32xf32>
    %188 = vector.broadcast %115 : vector<1x32xf32> to vector<12x32xf32>
    %189 = arith.mulf %187, %188 : vector<12x32xf32>
    %190 = vector.broadcast %116 : vector<1x32xf32> to vector<12x32xf32>
    %191 = arith.addf %189, %190 : vector<12x32xf32>
    %cst_86 = arith.constant 0.000000e+00 : f32
    %192 = vector.broadcast %cst_86 : f32 to vector<12x32xf32>
    %193 = arith.maximumf %191, %192 : vector<12x32xf32>
    %c1_87 = arith.constant 1 : index
    %c0_88 = arith.constant 0 : index
    %c0_89 = arith.constant 0 : index
    %194 = vector.load %arg6[%c1_87, %c0_88, %c0_89] : memref<3x32x32xf32, #tpu.memory_space<vmem>>, vector<1x32x32xf32>
    %195 = vector.shape_cast %194 : vector<1x32x32xf32> to vector<32x32xf32>
    %c1_90 = arith.constant 1 : index
    %c0_91 = arith.constant 0 : index
    %c0_92 = arith.constant 0 : index
    %196 = vector.load %arg7[%c1_90, %c0_91, %c0_92] : memref<3x32x32xf32, #tpu.memory_space<vmem>>, vector<1x32x32xf32>
    %197 = vector.shape_cast %196 : vector<1x32x32xf32> to vector<32x32xf32>
    %c2 = arith.constant 2 : index
    %c0_93 = arith.constant 0 : index
    %c0_94 = arith.constant 0 : index
    %198 = vector.load %arg8[%c2, %c0_93, %c0_94] : memref<4x32x4xf32, #tpu.memory_space<vmem>>, vector<1x32x4xf32>
    %199 = vector.shape_cast %198 : vector<1x32x4xf32> to vector<32x4xf32>
    %c2_95 = arith.constant 2 : index
    %c0_96 = arith.constant 0 : index
    %c0_97 = arith.constant 0 : index
    %200 = vector.load %arg9[%c2_95, %c0_96, %c0_97] : memref<4x32x32xf32, #tpu.memory_space<vmem>>, vector<1x32x32xf32>
    %201 = vector.shape_cast %200 : vector<1x32x32xf32> to vector<32x32xf32>
    %c2_98 = arith.constant 2 : index
    %c0_99 = arith.constant 0 : index
    %c0_100 = arith.constant 0 : index
    %202 = vector.load %arg10[%c2_98, %c0_99, %c0_100] : memref<4x32x32xf32, #tpu.memory_space<vmem>>, vector<1x32x32xf32>
    %203 = vector.shape_cast %202 : vector<1x32x32xf32> to vector<32x32xf32>
    %c2_101 = arith.constant 2 : index
    %c0_102 = arith.constant 0 : index
    %c0_103 = arith.constant 0 : index
    %204 = vector.load %arg11[%c2_101, %c0_102, %c0_103] : memref<4x8x32xf32, #tpu.memory_space<vmem>>, vector<1x8x32xf32>
    %205 = vector.shape_cast %204 : vector<1x8x32xf32> to vector<8x32xf32>
    %206 = vector.extract_strided_slice %205 {offsets = [0, 0], sizes = [1, 32], strides = [1, 1]} : vector<8x32xf32> to vector<1x32xf32>
    %207 = vector.extract_strided_slice %205 {offsets = [1, 0], sizes = [1, 32], strides = [1, 1]} : vector<8x32xf32> to vector<1x32xf32>
    %208 = vector.extract_strided_slice %205 {offsets = [2, 0], sizes = [1, 32], strides = [1, 1]} : vector<8x32xf32> to vector<1x32xf32>
    %209 = vector.extract_strided_slice %205 {offsets = [3, 0], sizes = [1, 32], strides = [1, 1]} : vector<8x32xf32> to vector<1x32xf32>
    %210 = vector.extract_strided_slice %205 {offsets = [4, 0], sizes = [1, 32], strides = [1, 1]} : vector<8x32xf32> to vector<1x32xf32>
    %211 = vector.extract_strided_slice %205 {offsets = [5, 0], sizes = [1, 32], strides = [1, 1]} : vector<8x32xf32> to vector<1x32xf32>
    %212 = vector.extract_strided_slice %205 {offsets = [6, 0], sizes = [1, 32], strides = [1, 1]} : vector<8x32xf32> to vector<1x32xf32>
    %cst_104 = arith.constant dense<0.000000e+00> : vector<12x32xf32>
    %213 = tpu.matmul %193, %195, %cst_104 {dimension_numbers = #tpu.dot_dimension_numbers<[1], [0], [0], [1], [0, 0, 1, 1], [], []>} : vector<12x32xf32>, vector<32x32xf32>, vector<12x32xf32> -> vector<12x32xf32>
    %cst_105 = arith.constant dense<0.000000e+00> : vector<12x32xf32>
    %214 = tpu.matmul %193, %197, %cst_105 {dimension_numbers = #tpu.dot_dimension_numbers<[1], [0], [0], [1], [0, 0, 1, 1], [], []>} : vector<12x32xf32>, vector<32x32xf32>, vector<12x32xf32> -> vector<12x32xf32>
    %cst_106 = arith.constant dense<0.000000e+00> : vector<12x4xf32>
    %215 = tpu.matmul %213, %199, %cst_106 {dimension_numbers = #tpu.dot_dimension_numbers<[1], [0], [0], [1], [0, 0, 1, 1], [], []>} : vector<12x32xf32>, vector<32x4xf32>, vector<12x4xf32> -> vector<12x4xf32>
    %cst_107 = arith.constant dense<0xFF800000> : vector<4xf32>
    %216 = vector.multi_reduction <maximumf>, %215, %cst_107 [0] : vector<12x4xf32> to vector<4xf32>
    %217 = vector.shape_cast %216 : vector<4xf32> to vector<1x4xf32>
    %218 = vector.broadcast %217 : vector<1x4xf32> to vector<12x4xf32>
    %219 = arith.subf %215, %218 : vector<12x4xf32>
    %220 = math.exp %219 : vector<12x4xf32>
    %cst_108 = arith.constant dense<0.000000e+00> : vector<12x32xf32>
    %221 = tpu.matmul %220, %0, %cst_108 {dimension_numbers = #tpu.dot_dimension_numbers<[1], [0], [0], [1], [0, 0, 1, 1], [], []>} : vector<12x4xf32>, vector<4x32xf32>, vector<12x32xf32> -> vector<12x32xf32>
    %222 = arith.mulf %221, %214 : vector<12x32xf32>
    %cst_109 = arith.constant dense<0.000000e+00> : vector<6x32xf32>
    %223 = tpu.matmul %1, %222, %cst_109 {dimension_numbers = #tpu.dot_dimension_numbers<[1], [0], [0], [1], [0, 0, 1, 1], [], []>} : vector<6x12xf32>, vector<12x32xf32>, vector<6x32xf32> -> vector<6x32xf32>
    %cst_110 = arith.constant dense<0.000000e+00> : vector<6x32xf32>
    %224 = tpu.matmul %1, %221, %cst_110 {dimension_numbers = #tpu.dot_dimension_numbers<[1], [0], [0], [1], [0, 0, 1, 1], [], []>} : vector<6x12xf32>, vector<12x32xf32>, vector<6x32xf32> -> vector<6x32xf32>
    %cst_111 = arith.constant 0.000000e+00 : f32
    %225 = vector.broadcast %cst_111 : f32 to vector<6x32xf32>
    %226 = arith.cmpf ogt, %224, %225 : vector<6x32xf32>
    %cst_112 = arith.constant 1.000000e+00 : f32
    %227 = vector.broadcast %cst_112 : f32 to vector<6x32xf32>
    %228 = arith.select %226, %224, %227 : vector<6x32xi1>, vector<6x32xf32>
    %229 = tpu.reciprocal %228 {approx = true} : vector<6x32xf32> -> vector<6x32xf32>
    %230 = arith.mulf %223, %229 : vector<6x32xf32>
    %231 = vector.broadcast %206 : vector<1x32xf32> to vector<6x32xf32>
    %232 = arith.addf %230, %231 : vector<6x32xf32>
    %cst_113 = arith.constant dense<0.000000e+00> : vector<6xf32>
    %233 = vector.multi_reduction <add>, %232, %cst_113 [1] : vector<6x32xf32> to vector<6xf32>
    %234 = vector.shape_cast %233 : vector<6xf32> to vector<6x1xf32>
    %cst_114 = arith.constant 3.200000e+01 : f32
    %235 = vector.broadcast %cst_114 : f32 to vector<6x1xf32>
    %236 = arith.divf %234, %235 : vector<6x1xf32>
    %237 = vector.broadcast %236 : vector<6x1xf32> to vector<6x32xf32>
    %238 = arith.subf %232, %237 : vector<6x32xf32>
    %239 = arith.mulf %238, %238 : vector<6x32xf32>
    %cst_115 = arith.constant dense<0.000000e+00> : vector<6xf32>
    %240 = vector.multi_reduction <add>, %239, %cst_115 [1] : vector<6x32xf32> to vector<6xf32>
    %241 = vector.shape_cast %240 : vector<6xf32> to vector<6x1xf32>
    %cst_116 = arith.constant 3.200000e+01 : f32
    %242 = vector.broadcast %cst_116 : f32 to vector<6x1xf32>
    %243 = arith.divf %241, %242 : vector<6x1xf32>
    %244 = vector.broadcast %236 : vector<6x1xf32> to vector<6x32xf32>
    %245 = arith.subf %232, %244 : vector<6x32xf32>
    %cst_117 = arith.constant 9.99999974E-6 : f32
    %246 = vector.broadcast %cst_117 : f32 to vector<6x1xf32>
    %247 = arith.addf %243, %246 : vector<6x1xf32>
    %248 = math.rsqrt %247 : vector<6x1xf32>
    %249 = vector.broadcast %248 : vector<6x1xf32> to vector<6x32xf32>
    %250 = arith.mulf %245, %249 : vector<6x32xf32>
    %251 = vector.broadcast %207 : vector<1x32xf32> to vector<6x32xf32>
    %252 = arith.mulf %250, %251 : vector<6x32xf32>
    %253 = vector.broadcast %208 : vector<1x32xf32> to vector<6x32xf32>
    %254 = arith.addf %252, %253 : vector<6x32xf32>
    %cst_118 = arith.constant dense<0.000000e+00> : vector<6x32xf32>
    %255 = tpu.matmul %254, %201, %cst_118 {dimension_numbers = #tpu.dot_dimension_numbers<[1], [0], [0], [1], [0, 0, 1, 1], [], []>} : vector<6x32xf32>, vector<32x32xf32>, vector<6x32xf32> -> vector<6x32xf32>
    %256 = vector.broadcast %209 : vector<1x32xf32> to vector<6x32xf32>
    %257 = arith.addf %255, %256 : vector<6x32xf32>
    %cst_119 = arith.constant 0.000000e+00 : f32
    %258 = vector.broadcast %cst_119 : f32 to vector<6x32xf32>
    %259 = arith.maximumf %257, %258 : vector<6x32xf32>
    %cst_120 = arith.constant dense<0.000000e+00> : vector<6x32xf32>
    %260 = tpu.matmul %259, %203, %cst_120 {dimension_numbers = #tpu.dot_dimension_numbers<[1], [0], [0], [1], [0, 0, 1, 1], [], []>} : vector<6x32xf32>, vector<32x32xf32>, vector<6x32xf32> -> vector<6x32xf32>
    %261 = vector.broadcast %210 : vector<1x32xf32> to vector<6x32xf32>
    %262 = arith.addf %260, %261 : vector<6x32xf32>
    %cst_121 = arith.constant 0.000000e+00 : f32
    %263 = vector.broadcast %cst_121 : f32 to vector<6x32xf32>
    %264 = arith.maximumf %262, %263 : vector<6x32xf32>
    %265 = arith.addf %254, %264 : vector<6x32xf32>
    %cst_122 = arith.constant dense<0.000000e+00> : vector<6xf32>
    %266 = vector.multi_reduction <add>, %265, %cst_122 [1] : vector<6x32xf32> to vector<6xf32>
    %267 = vector.shape_cast %266 : vector<6xf32> to vector<6x1xf32>
    %cst_123 = arith.constant 3.200000e+01 : f32
    %268 = vector.broadcast %cst_123 : f32 to vector<6x1xf32>
    %269 = arith.divf %267, %268 : vector<6x1xf32>
    %270 = vector.broadcast %269 : vector<6x1xf32> to vector<6x32xf32>
    %271 = arith.subf %265, %270 : vector<6x32xf32>
    %272 = arith.mulf %271, %271 : vector<6x32xf32>
    %cst_124 = arith.constant dense<0.000000e+00> : vector<6xf32>
    %273 = vector.multi_reduction <add>, %272, %cst_124 [1] : vector<6x32xf32> to vector<6xf32>
    %274 = vector.shape_cast %273 : vector<6xf32> to vector<6x1xf32>
    %cst_125 = arith.constant 3.200000e+01 : f32
    %275 = vector.broadcast %cst_125 : f32 to vector<6x1xf32>
    %276 = arith.divf %274, %275 : vector<6x1xf32>
    %277 = vector.broadcast %269 : vector<6x1xf32> to vector<6x32xf32>
    %278 = arith.subf %265, %277 : vector<6x32xf32>
    %cst_126 = arith.constant 9.99999974E-6 : f32
    %279 = vector.broadcast %cst_126 : f32 to vector<6x1xf32>
    %280 = arith.addf %276, %279 : vector<6x1xf32>
    %281 = math.rsqrt %280 : vector<6x1xf32>
    %282 = vector.broadcast %281 : vector<6x1xf32> to vector<6x32xf32>
    %283 = arith.mulf %278, %282 : vector<6x32xf32>
    %284 = vector.broadcast %211 : vector<1x32xf32> to vector<6x32xf32>
    %285 = arith.mulf %283, %284 : vector<6x32xf32>
    %286 = vector.broadcast %212 : vector<1x32xf32> to vector<6x32xf32>
    %287 = arith.addf %285, %286 : vector<6x32xf32>
    %cst_127 = arith.constant 0.000000e+00 : f32
    %288 = vector.broadcast %cst_127 : f32 to vector<6x32xf32>
    %289 = arith.maximumf %287, %288 : vector<6x32xf32>
    %c2_128 = arith.constant 2 : index
    %c0_129 = arith.constant 0 : index
    %c0_130 = arith.constant 0 : index
    %290 = vector.load %arg6[%c2_128, %c0_129, %c0_130] : memref<3x32x32xf32, #tpu.memory_space<vmem>>, vector<1x32x32xf32>
    %291 = vector.shape_cast %290 : vector<1x32x32xf32> to vector<32x32xf32>
    %c2_131 = arith.constant 2 : index
    %c0_132 = arith.constant 0 : index
    %c0_133 = arith.constant 0 : index
    %292 = vector.load %arg7[%c2_131, %c0_132, %c0_133] : memref<3x32x32xf32, #tpu.memory_space<vmem>>, vector<1x32x32xf32>
    %293 = vector.shape_cast %292 : vector<1x32x32xf32> to vector<32x32xf32>
    %c3 = arith.constant 3 : index
    %c0_134 = arith.constant 0 : index
    %c0_135 = arith.constant 0 : index
    %294 = vector.load %arg8[%c3, %c0_134, %c0_135] : memref<4x32x4xf32, #tpu.memory_space<vmem>>, vector<1x32x4xf32>
    %295 = vector.shape_cast %294 : vector<1x32x4xf32> to vector<32x4xf32>
    %c3_136 = arith.constant 3 : index
    %c0_137 = arith.constant 0 : index
    %c0_138 = arith.constant 0 : index
    %296 = vector.load %arg9[%c3_136, %c0_137, %c0_138] : memref<4x32x32xf32, #tpu.memory_space<vmem>>, vector<1x32x32xf32>
    %297 = vector.shape_cast %296 : vector<1x32x32xf32> to vector<32x32xf32>
    %c3_139 = arith.constant 3 : index
    %c0_140 = arith.constant 0 : index
    %c0_141 = arith.constant 0 : index
    %298 = vector.load %arg10[%c3_139, %c0_140, %c0_141] : memref<4x32x32xf32, #tpu.memory_space<vmem>>, vector<1x32x32xf32>
    %299 = vector.shape_cast %298 : vector<1x32x32xf32> to vector<32x32xf32>
    %c3_142 = arith.constant 3 : index
    %c0_143 = arith.constant 0 : index
    %c0_144 = arith.constant 0 : index
    %300 = vector.load %arg11[%c3_142, %c0_143, %c0_144] : memref<4x8x32xf32, #tpu.memory_space<vmem>>, vector<1x8x32xf32>
    %301 = vector.shape_cast %300 : vector<1x8x32xf32> to vector<8x32xf32>
    %302 = vector.extract_strided_slice %301 {offsets = [0, 0], sizes = [1, 32], strides = [1, 1]} : vector<8x32xf32> to vector<1x32xf32>
    %303 = vector.extract_strided_slice %301 {offsets = [1, 0], sizes = [1, 32], strides = [1, 1]} : vector<8x32xf32> to vector<1x32xf32>
    %304 = vector.extract_strided_slice %301 {offsets = [2, 0], sizes = [1, 32], strides = [1, 1]} : vector<8x32xf32> to vector<1x32xf32>
    %305 = vector.extract_strided_slice %301 {offsets = [3, 0], sizes = [1, 32], strides = [1, 1]} : vector<8x32xf32> to vector<1x32xf32>
    %306 = vector.extract_strided_slice %301 {offsets = [4, 0], sizes = [1, 32], strides = [1, 1]} : vector<8x32xf32> to vector<1x32xf32>
    %307 = vector.extract_strided_slice %301 {offsets = [5, 0], sizes = [1, 32], strides = [1, 1]} : vector<8x32xf32> to vector<1x32xf32>
    %308 = vector.extract_strided_slice %301 {offsets = [6, 0], sizes = [1, 32], strides = [1, 1]} : vector<8x32xf32> to vector<1x32xf32>
    %cst_145 = arith.constant dense<0.000000e+00> : vector<6x32xf32>
    %309 = tpu.matmul %289, %291, %cst_145 {dimension_numbers = #tpu.dot_dimension_numbers<[1], [0], [0], [1], [0, 0, 1, 1], [], []>} : vector<6x32xf32>, vector<32x32xf32>, vector<6x32xf32> -> vector<6x32xf32>
    %cst_146 = arith.constant dense<0.000000e+00> : vector<6x32xf32>
    %310 = tpu.matmul %289, %293, %cst_146 {dimension_numbers = #tpu.dot_dimension_numbers<[1], [0], [0], [1], [0, 0, 1, 1], [], []>} : vector<6x32xf32>, vector<32x32xf32>, vector<6x32xf32> -> vector<6x32xf32>
    %cst_147 = arith.constant dense<0.000000e+00> : vector<6x4xf32>
    %311 = tpu.matmul %309, %295, %cst_147 {dimension_numbers = #tpu.dot_dimension_numbers<[1], [0], [0], [1], [0, 0, 1, 1], [], []>} : vector<6x32xf32>, vector<32x4xf32>, vector<6x4xf32> -> vector<6x4xf32>
    %cst_148 = arith.constant dense<0xFF800000> : vector<4xf32>
    %312 = vector.multi_reduction <maximumf>, %311, %cst_148 [0] : vector<6x4xf32> to vector<4xf32>
    %313 = vector.shape_cast %312 : vector<4xf32> to vector<1x4xf32>
    %314 = vector.broadcast %313 : vector<1x4xf32> to vector<6x4xf32>
    %315 = arith.subf %311, %314 : vector<6x4xf32>
    %316 = math.exp %315 : vector<6x4xf32>
    %cst_149 = arith.constant dense<0.000000e+00> : vector<6x32xf32>
    %317 = tpu.matmul %316, %0, %cst_149 {dimension_numbers = #tpu.dot_dimension_numbers<[1], [0], [0], [1], [0, 0, 1, 1], [], []>} : vector<6x4xf32>, vector<4x32xf32>, vector<6x32xf32> -> vector<6x32xf32>
    %318 = arith.mulf %317, %310 : vector<6x32xf32>
    %cst_150 = arith.constant dense<0.000000e+00> : vector<12x32xf32>
    %319 = tpu.matmul %2, %318, %cst_150 {dimension_numbers = #tpu.dot_dimension_numbers<[1], [0], [0], [1], [0, 0, 1, 1], [], []>} : vector<12x6xf32>, vector<6x32xf32>, vector<12x32xf32> -> vector<12x32xf32>
    %cst_151 = arith.constant dense<0.000000e+00> : vector<12x32xf32>
    %320 = tpu.matmul %2, %317, %cst_151 {dimension_numbers = #tpu.dot_dimension_numbers<[1], [0], [0], [1], [0, 0, 1, 1], [], []>} : vector<12x6xf32>, vector<6x32xf32>, vector<12x32xf32> -> vector<12x32xf32>
    %cst_152 = arith.constant 0.000000e+00 : f32
    %321 = vector.broadcast %cst_152 : f32 to vector<12x32xf32>
    %322 = arith.cmpf ogt, %320, %321 : vector<12x32xf32>
    %cst_153 = arith.constant 1.000000e+00 : f32
    %323 = vector.broadcast %cst_153 : f32 to vector<12x32xf32>
    %324 = arith.select %322, %320, %323 : vector<12x32xi1>, vector<12x32xf32>
    %325 = tpu.reciprocal %324 {approx = true} : vector<12x32xf32> -> vector<12x32xf32>
    %326 = arith.mulf %319, %325 : vector<12x32xf32>
    %327 = vector.broadcast %302 : vector<1x32xf32> to vector<12x32xf32>
    %328 = arith.addf %326, %327 : vector<12x32xf32>
    %cst_154 = arith.constant dense<0.000000e+00> : vector<12xf32>
    %329 = vector.multi_reduction <add>, %328, %cst_154 [1] : vector<12x32xf32> to vector<12xf32>
    %330 = vector.shape_cast %329 : vector<12xf32> to vector<12x1xf32>
    %cst_155 = arith.constant 3.200000e+01 : f32
    %331 = vector.broadcast %cst_155 : f32 to vector<12x1xf32>
    %332 = arith.divf %330, %331 : vector<12x1xf32>
    %333 = vector.broadcast %332 : vector<12x1xf32> to vector<12x32xf32>
    %334 = arith.subf %328, %333 : vector<12x32xf32>
    %335 = arith.mulf %334, %334 : vector<12x32xf32>
    %cst_156 = arith.constant dense<0.000000e+00> : vector<12xf32>
    %336 = vector.multi_reduction <add>, %335, %cst_156 [1] : vector<12x32xf32> to vector<12xf32>
    %337 = vector.shape_cast %336 : vector<12xf32> to vector<12x1xf32>
    %cst_157 = arith.constant 3.200000e+01 : f32
    %338 = vector.broadcast %cst_157 : f32 to vector<12x1xf32>
    %339 = arith.divf %337, %338 : vector<12x1xf32>
    %340 = vector.broadcast %332 : vector<12x1xf32> to vector<12x32xf32>
    %341 = arith.subf %328, %340 : vector<12x32xf32>
    %cst_158 = arith.constant 9.99999974E-6 : f32
    %342 = vector.broadcast %cst_158 : f32 to vector<12x1xf32>
    %343 = arith.addf %339, %342 : vector<12x1xf32>
    %344 = math.rsqrt %343 : vector<12x1xf32>
    %345 = vector.broadcast %344 : vector<12x1xf32> to vector<12x32xf32>
    %346 = arith.mulf %341, %345 : vector<12x32xf32>
    %347 = vector.broadcast %303 : vector<1x32xf32> to vector<12x32xf32>
    %348 = arith.mulf %346, %347 : vector<12x32xf32>
    %349 = vector.broadcast %304 : vector<1x32xf32> to vector<12x32xf32>
    %350 = arith.addf %348, %349 : vector<12x32xf32>
    %cst_159 = arith.constant dense<0.000000e+00> : vector<12x32xf32>
    %351 = tpu.matmul %350, %297, %cst_159 {dimension_numbers = #tpu.dot_dimension_numbers<[1], [0], [0], [1], [0, 0, 1, 1], [], []>} : vector<12x32xf32>, vector<32x32xf32>, vector<12x32xf32> -> vector<12x32xf32>
    %352 = vector.broadcast %305 : vector<1x32xf32> to vector<12x32xf32>
    %353 = arith.addf %351, %352 : vector<12x32xf32>
    %cst_160 = arith.constant 0.000000e+00 : f32
    %354 = vector.broadcast %cst_160 : f32 to vector<12x32xf32>
    %355 = arith.maximumf %353, %354 : vector<12x32xf32>
    %cst_161 = arith.constant dense<0.000000e+00> : vector<12x32xf32>
    %356 = tpu.matmul %355, %299, %cst_161 {dimension_numbers = #tpu.dot_dimension_numbers<[1], [0], [0], [1], [0, 0, 1, 1], [], []>} : vector<12x32xf32>, vector<32x32xf32>, vector<12x32xf32> -> vector<12x32xf32>
    %357 = vector.broadcast %306 : vector<1x32xf32> to vector<12x32xf32>
    %358 = arith.addf %356, %357 : vector<12x32xf32>
    %cst_162 = arith.constant 0.000000e+00 : f32
    %359 = vector.broadcast %cst_162 : f32 to vector<12x32xf32>
    %360 = arith.maximumf %358, %359 : vector<12x32xf32>
    %361 = arith.addf %350, %360 : vector<12x32xf32>
    %cst_163 = arith.constant dense<0.000000e+00> : vector<12xf32>
    %362 = vector.multi_reduction <add>, %361, %cst_163 [1] : vector<12x32xf32> to vector<12xf32>
    %363 = vector.shape_cast %362 : vector<12xf32> to vector<12x1xf32>
    %cst_164 = arith.constant 3.200000e+01 : f32
    %364 = vector.broadcast %cst_164 : f32 to vector<12x1xf32>
    %365 = arith.divf %363, %364 : vector<12x1xf32>
    %366 = vector.broadcast %365 : vector<12x1xf32> to vector<12x32xf32>
    %367 = arith.subf %361, %366 : vector<12x32xf32>
    %368 = arith.mulf %367, %367 : vector<12x32xf32>
    %cst_165 = arith.constant dense<0.000000e+00> : vector<12xf32>
    %369 = vector.multi_reduction <add>, %368, %cst_165 [1] : vector<12x32xf32> to vector<12xf32>
    %370 = vector.shape_cast %369 : vector<12xf32> to vector<12x1xf32>
    %cst_166 = arith.constant 3.200000e+01 : f32
    %371 = vector.broadcast %cst_166 : f32 to vector<12x1xf32>
    %372 = arith.divf %370, %371 : vector<12x1xf32>
    %373 = vector.broadcast %365 : vector<12x1xf32> to vector<12x32xf32>
    %374 = arith.subf %361, %373 : vector<12x32xf32>
    %cst_167 = arith.constant 9.99999974E-6 : f32
    %375 = vector.broadcast %cst_167 : f32 to vector<12x1xf32>
    %376 = arith.addf %372, %375 : vector<12x1xf32>
    %377 = math.rsqrt %376 : vector<12x1xf32>
    %378 = vector.broadcast %377 : vector<12x1xf32> to vector<12x32xf32>
    %379 = arith.mulf %374, %378 : vector<12x32xf32>
    %380 = vector.broadcast %307 : vector<1x32xf32> to vector<12x32xf32>
    %381 = arith.mulf %379, %380 : vector<12x32xf32>
    %382 = vector.broadcast %308 : vector<1x32xf32> to vector<12x32xf32>
    %383 = arith.addf %381, %382 : vector<12x32xf32>
    %cst_168 = arith.constant 0.000000e+00 : f32
    %384 = vector.broadcast %cst_168 : f32 to vector<12x32xf32>
    %385 = arith.maximumf %383, %384 : vector<12x32xf32>
    %cst_169 = arith.constant dense<0xFF800000> : vector<32xf32>
    %386 = vector.multi_reduction <maximumf>, %385, %cst_169 [0] : vector<12x32xf32> to vector<32xf32>
    %387 = vector.shape_cast %386 : vector<32xf32> to vector<1x32xf32>
    %c0_170 = arith.constant 0 : index
    %c0_171 = arith.constant 0 : index
    %388 = vector.load %arg12[%c0_170, %c0_171] : memref<32x4xf32, #tpu.memory_space<vmem>>, vector<32x4xf32>
    %cst_172 = arith.constant dense<0.000000e+00> : vector<1x4xf32>
    %389 = tpu.matmul %387, %388, %cst_172 {dimension_numbers = #tpu.dot_dimension_numbers<[1], [0], [0], [1], [0, 0, 1, 1], [], []>} : vector<1x32xf32>, vector<32x4xf32>, vector<1x4xf32> -> vector<1x4xf32>
    %c0_173 = arith.constant 0 : index
    %c0_174 = arith.constant 0 : index
    %390 = vector.load %arg13[%c0_173, %c0_174] : memref<1x4xf32, #tpu.memory_space<vmem>>, vector<1x4xf32>
    %391 = arith.addf %389, %390 : vector<1x4xf32>
    %cst_175 = arith.constant 0.000000e+00 : f32
    %392 = vector.broadcast %cst_175 : f32 to vector<1x4xf32>
    %393 = arith.subf %392, %391 : vector<1x4xf32>
    %394 = math.exp %393 : vector<1x4xf32>
    %cst_176 = arith.constant 1.000000e+00 : f32
    %395 = vector.broadcast %cst_176 : f32 to vector<1x4xf32>
    %396 = arith.addf %395, %394 : vector<1x4xf32>
    %cst_177 = arith.constant 1.000000e+00 : f32
    %397 = vector.broadcast %cst_177 : f32 to vector<1x4xf32>
    %398 = arith.divf %397, %396 : vector<1x4xf32>
    %c0_178 = arith.constant 0 : index
    %c0_179 = arith.constant 0 : index
    %399 = vector.load %arg14[%c0_178, %c0_179] : memref<1x4xf32, #tpu.memory_space<vmem>>, vector<1x4xf32>
    tpu.vector_store %arg14[%c0_178, %c0_179], %398 {strides = array<i32>} : memref<1x4xf32, #tpu.memory_space<vmem>>, vector<1x4xf32>,
    return
  }
}

</mosaic_0001>

<bundles_post_ra>
// kernel: allset_transformer_forward.1
= control target key start
LH: loop header
LB: loop body
LE: loop exit
PB: predicated region body
PF: predicated region fallthrough
CT: control target
= control target key end

     0   :  { %19 = vsyncpa [#allocation3], 0  ;;  %s4604_s0 = inlined_call_operand.vmem [shape: f32[12,8], index: 0, kind: input, shape index: {}]   ;;  %s4605_s1 = inlined_call_operand.vmem [shape: f32[6,12], index: 1, kind: input, shape index: {}]   ;;  %s4606_s2 = inlined_call_operand.vmem [shape: f32[12,6], index: 2, kind: input, shape index: {}]   ;;  %s4607_s3 = inlined_call_operand.hbm [shape: f32[4,32], index: 3, kind: input, shape index: {}]   ;;  %s4608_s4 = inlined_call_operand.vmem [shape: f32[8,32], index: 4, kind: input, shape index: {}]   ;;  %s4609_s5 = inlined_call_operand.vmem [shape: f32[8,32], index: 5, kind: input, shape index: {}]   ;;  %s4610_s6 = inlined_call_operand.hbm [shape: f32[3,32,32], index: 6, kind: input, shape index: {}]   ;;  %s4611_s7 = inlined_call_operand.hbm [shape: f32[3,32,32], index: 7, kind: input, shape index: {}]   ;;  %s4612_s8 = inlined_call_operand.vmem [shape: f32[4,32,4], index: 8, kind: input, shape index: {}]   ;;  %s4613_s9 = inlined_call_operand.vmem [shape: f32[4,32,32], index: 9, kind: input, shape index: {}]   ;;  %s4614_s10 = inlined_call_operand.vmem [shape: f32[4,32,32], index: 10, kind: input, shape index: {}]   ;;  %s4615_s11 = inlined_call_operand.vmem [shape: f32[4,8,32], index: 11, kind: input, shape index: {}]   ;;  %s4616_s12 = inlined_call_operand.vmem [shape: f32[32,4], index: 12, kind: input, shape index: {}]   ;;  %s4617_s13 = inlined_call_operand.vmem [shape: f32[1,4], index: 13, kind: input, shape index: {}]   ;;  %s4618_s14 = inlined_call_operand.hbm [shape: f32[1,4], index: 14, kind: output, shape index: {}]  }
   0x1   :  { %20 = vsyncpa [#allocation6], 0 }
   0x2   :  { %21 = vsyncpa [#allocation4], 0  ;;  %s3991_s29 = smov [#allocation5]   ;;  %s3897_s17 = scalar_lea.hbm %s4610_s6, 1536 }
   0x3   :  { %s47_s30 = sshll.u32 %s3991_s29, 4  ;;  %p3898_p0 = scmp.ne.s32.totalorder %s4610_s6, %s3897_s17  ;;  %s48_s30 = int_to_ptr.vmem [resolvable:$true] %s47_s30 }
   0x4   :  { %p3901_p1 = scmp.lt.u32.totalorder %s3897_s17, %s4610_s6 }
   0x6   :  { %p3903_p2 = pnand %p3901_p1, %p3898_p0 }
   0x8   :  { %3906 = shalt.err (!%p3903_p2)
}
   0x9   :  { %s3907_s22 = scalar_lea.vmem %s48_s30, 1536  ;;  %p3912_p4 = scmp.lt.s32.totalorder %s48_s30, %s48_s30 }
   0xa   :  { %p3908_p3 = scmp.ne.s32.totalorder %s48_s30, %s3907_s22  ;;  %p3913_p5 = scmp.lt.s32.totalorder %s3907_s22, %s3907_s22 }
   0xc   :  { %p3914_p6 = por %p3913_p5, %p3912_p4 }
   0xe   :  { %p3915_p7 = pnand %p3914_p6, %p3908_p3 }
  0x10   :  { %3918 = shalt.err (!%p3915_p7)
}
  0x11   :  { %s3992_s23 = smov 128   ;;  %s3993_s24 = smov 8  }
  0x12   :  { %53 = dma.hbm_to_vmem [thread:$0]  %s4610_s6, 1536, %s48_s30, [#allocation6], %s3992_s23, %s3992_s23, %s3993_s24  }
  0x13   :  { %s3994_s27 = smov [#allocation2]   ;;  %s3995_s29 = smov [#allocation7]  }
  0x14   :  { %s34_s28 = sshll.u32 %s3994_s27, 4  ;;  %s59_s15 = sshll.u32 %s3995_s29, 4  ;;  %s35_s28 = int_to_ptr.vmem [resolvable:$true] %s34_s28  ;;  %s60_s15 = int_to_ptr.vmem [resolvable:$true] %s59_s15 }
  0x15   :  { %s3919_s18 = scalar_lea.hbm %s4607_s3, 64 }
  0x16   :  { %p3920_p8 = scmp.ne.s32.totalorder %s4607_s3, %s3919_s18  ;;  %p3923_p9 = scmp.lt.u32.totalorder %s3919_s18, %s4607_s3 }
  0x18   :  { %p3925_p10 = pnand %p3923_p9, %p3920_p8 }
  0x1a   :  { %3928 = shalt.err (!%p3925_p10)
}
  0x1b   :  { %s3929_s6 = scalar_lea.vmem %s35_s28, 64  ;;  %p3934_p12 = scmp.lt.s32.totalorder %s35_s28, %s35_s28 }
  0x1c   :  { %p3930_p11 = scmp.ne.s32.totalorder %s35_s28, %s3929_s6  ;;  %p3935_p13 = scmp.lt.s32.totalorder %s3929_s6, %s3929_s6 }
  0x1e   :  { %p3936_p0 = por %p3935_p13, %p3934_p12 }
  0x20   :  { %p3937_p1 = pnand %p3936_p0, %p3930_p11 }
  0x22   :  { %3940 = shalt.err (!%p3937_p1)
}
  0x23   :  { %37 = dma.hbm_to_vmem [thread:$0]  %s4607_s3, 64, %s35_s28, [#allocation3]  }
  0x24   :  { %s3941_s29 = scalar_lea.hbm %s4611_s7, 1536 }
  0x25   :  { %p3942_p2 = scmp.ne.s32.totalorder %s4611_s7, %s3941_s29  ;;  %p3945_p3 = scmp.lt.u32.totalorder %s3941_s29, %s4611_s7 }
  0x27   :  { %p3947_p4 = pnand %p3945_p3, %p3942_p2 }
  0x29   :  { %3950 = shalt.err (!%p3947_p4)
}
  0x2a   :  { %s3951_s20 = scalar_lea.vmem %s60_s15, 1536  ;;  %p3956_p6 = scmp.lt.s32.totalorder %s60_s15, %s60_s15 }
  0x2b   :  { %p3952_p5 = scmp.ne.s32.totalorder %s60_s15, %s3951_s20  ;;  %p3957_p7 = scmp.lt.s32.totalorder %s3951_s20, %s3951_s20 }
  0x2d   :  { %p3958_p8 = por %p3957_p7, %p3956_p6 }
  0x2f   :  { %p3959_p9 = pnand %p3958_p8, %p3952_p5 }
  0x31   :  { %3962 = shalt.err (!%p3959_p9)
}
  0x32   :  { %65 = dma.hbm_to_vmem [thread:$0]  %s4611_s7, 1536, %s60_s15, [#allocation6], %s3992_s23, %s3992_s23, %s3993_s24  }
  0x33   :  { %3985 = dma.done.wait [#allocation3], 64  }
  0x34   :  { %3986 = vsyncadd [#allocation3], 4294967232 }
  0x35   :  { %3987 = dma.done.wait [#allocation6], 3072  }
  0x36   :  { %3988 = vsyncadd [#allocation6], 4294964224  ;;  %vm108_vm0 = vcmask 64512   ;;  %v93_v0 = vld [vmem:[%s4608_s4] sm:$0xff]  ;;  %v92_v2 = vld [vmem:[%s4604_s0 + $0x8] sm:$0xf]  ;;  %v605_v45 = vlaneseq }
  0x37   :  { %v91_v1 = vld [vmem:[%s4604_s0] sm:$0xff]  ;;  %3401 = vmatprep.subr.mxu0 %v93_v0  ;;  %v96_v4 = vld [vmem:[%s4612_s8 + $0x8] sm:$0xff]  ;;  %v97_v5 = vld [vmem:[%s4612_s8 + $0x10] sm:$0xff]  ;;  %vm265_vm1 = vcmask 261120   ;;  %vm370_vm2 = vcmask 1043456   ;;  %vm349_vm3 = vcmask 27648  }
  0x38   :  { %3403 = vmatprep.mubr.msk.f32.mxu0 %vm108_vm0, %v91_v1  ;;  %v95_v3 = vld [vmem:[%s4612_s8] sm:$0xff]  ;;  %3402 = vmatpush3.msra.mxu0 %v93_v0  ;;  %v98_v7 = vld [vmem:[%s4612_s8 + $0x18] sm:$0xff]  ;;  %vm347_vm4 = vcmask 31744   ;;  %v3996_v32 = vmov 0.0|0.0   ;;  %vm3997_vm5 = vmmov 0   ;;  %v3998_v33 = vmov 0.0  }
  0x39   :  { %v3688_v6 = vpack.c.bf16 %v96_v4, %v95_v3  ;;  %3408 = vmatprep.mubr.msk.f32.mxu1 %vm108_vm0, %v91_v1  ;;  %3404 = vmatmul.mubr.msk.f32.vlgmr.msra.gmra.mrb[0].mxu0 %vm108_vm0, %v92_v2  ;;  %v3692_v8 = vpack.c.bf16 %v98_v7, %v97_v5  ;;  %v94_v11 = vld [vmem:[%s4609_s5] sm:$0xff]  ;;  %vm3999_vm6 = vmmov 1   ;;  %vm451_vm8 = vcmask 97280   ;;  %v100_v62 = vld [vmem:[%s4613_s9 + $0x8] sm:$0xff]  ;;  %v101_v0 = vld [vmem:[%s4613_s9 + $0x10] sm:$0xff]  ;;  %s4000_s25 = smov [#allocation8]  }
  0x3a   :  { %v4147_v12 = vld [vmem:[#allocation2] sm:$0xf]  ;;  %3406 = vmatprep.subr.mxu1 %v94_v11  ;;  %vm4165_vm7 = vmpackc.low %vm370_vm2, %vm3999_vm6  ;;  %v4188_v48 = vshrl.u32 %v605_v45, 7  ;;  %vm610_vm10 = vcmask 259072   ;;  %v102_v1 = vld [vmem:[%s4613_s9 + $0x18] sm:$0xff]  ;;  %vm1057_vm11 = vcmask 29696  }
  0x3b   :  { %3689 = vmatprep.subr.bf16.mxu0 %v3688_v6  ;;  %3407 = vmatpush3.msra.mxu1 %v94_v11  ;;  %v4174_v41 = vld [vmem:[%s4605_s1] sm:$0x3f]  ;;  %v104_v4 = vld [vmem:[%s4614_s10 + $0x8] sm:$0xff]  ;;  %vm1142_vm12 = vcmask 48128   ;;  %vm1149_vm13 = vcmask 1045504  }
  0x3c   :  { %3691 = vmatpush3.bf16.msra.mxu0 %v3688_v6  ;;  %3409 = vmatmul.mubr.msk.f32.vlgmr.msra.gmra.mrb[0].mxu1 %vm108_vm0, %v92_v2  ;;  %v4191_v49 = vsub.s32 0, %v4188_v48  ;;  %v4196_v50 = vld [vmem:[%s4615_s11] sm:$0xff]  ;;  %v3708_v2 = vpack.c.bf16 %v102_v1, %v101_v0  ;;  %v817_v45 = vld [vmem:[#allocation5 + $0x8] sm:$0xff]  ;;  %vm1323_vm0 = vcmask 257024  }
  0x3d   :  { %3693 = vmatprep.subr.bf16.mxu0 %v3692_v8  ;;  %3422 = vmatprep.subr.msk.mxu1 %vm370_vm2, %v4147_v12  ;;  %v99_v61 = vld [vmem:[%s4613_s9] sm:$0xff] }
  0x3e   :  { %3423 = vmatpush3.msk.msra.mxu1 %vm370_vm2, %v4147_v12  ;;  %v608_v51 = vrot.slane %v4196_v50, %v4191_v49  ;;  %v3705_v63 = vpack.c.bf16 %v100_v62, %v99_v61  ;;  %v103_v3 = vld [vmem:[%s4614_s10] sm:$0xff]  ;;  %v4263_v62 = vsub.s32 5, %v4188_v48 }
  0x3f   :  { %3696 = vmatprep.subr.bf16.mxu1 %v3996_v32  ;;  %v3711_v5 = vpack.c.bf16 %v104_v4, %v103_v3 }
  0x40   :  { %3695 = vmatpush3.bf16.msra.mxu0 %v3692_v8  ;;  %v808_v0 = vrot.slane %v4196_v50, %v4263_v62 }
  0x41   :  { %3710 = vmatprep.subr.bf16.mxu0 %v3996_v32 }
 0x10c   :  { %v3405_v9 = vpop.f32.mrb[0].mxu0 }
 0x10d   :  { %v181_v10 = vpop.f32.mrb[1].mxu0 }
 0x10e   :  { %3419 = vmatprep.mubr.msk.f32.mxu0 %vm265_vm1, %v181_v10  ;;  %v4227_v10 = vsub.s32 2, %v4188_v48 }
 0x10f   :  { %3420 = vmatmul.mubr.msk.f32.vlgmr.msra.gmra.mrb[2].mxu0 %vm265_vm1, %v3405_v9  ;;  %v3410_v30 = vpop.f32.mrb[0].mxu1  ;;  %v4224_v9 = vsub.s32 1, %v4188_v48 }
 0x110   :  { %v256_v31 = vpop.f32.mrb[1].mxu1  ;;  %3460 = vmatprep.mubr.msk.f32.mxu0 %vm3997_vm5, %v3998_v33  ;;  %3712 = vmatpush3.bf16.msra.mxu0 %v3711_v5  ;;  %v3173_v5 = vld [vmem:[%s4612_s8 + $0x20] sm:$0xff] }
 0x111   :  { %3713 = vmatprep.subr.bf16.mxu0 %v3996_v32  ;;  %v628_v11 = vrot.slane %v4196_v50, %v4224_v9 }
 0x1e2   :  { %v3421_v13 = vpop.f32.mrb[2].mxu0 }
 0x1e3   :  { %v350_v14 = vsel %vm349_vm3, %v3421_v13, -inf  ;;  %v338_v15 = vpop.f32.mrb[3].mxu0 }
 0x1e4   :  { %v348_v16 = vsel %vm347_vm4, %v338_v15, -inf }
 0x1e5   :  { %v351_v17 = vmax.f32 %v348_v16, %v350_v14 }
 0x1e7   :  { %v352_v18 = vrot.slane %v351_v17, 4 }
 0x1e9   :  { %v353_v19 = vmax.f32 %v351_v17, %v352_v18  ;;  %v105_v18 = vld [vmem:[%s4614_s10 + $0x10] sm:$0xff] }
 0x1eb   :  { %v354_v20 = vrot.slane %v353_v19, 2 }
 0x1ed   :  { %v355_v21 = vmax.f32 %v353_v19, %v354_v20  ;;  %v106_v19 = vld [vmem:[%s4614_s10 + $0x18] sm:$0xff] }
 0x1ee   :  { %v3714_v20 = vpack.c.bf16 %v106_v19, %v105_v18 }
 0x1ef   :  { %v356_v22 = vrot.slane %v355_v21, 1 }
 0x1f0   :  { %3715 = vmatpush3.bf16.msra.mxu0 %v3714_v20 }
 0x1f1   :  { %v357_v23 = vmax.f32 %v355_v21, %v356_v22  ;;  %3722 = vmatprep.subr.bf16.mxu0 %v3996_v32  ;;  %v4244_v21 = vsub.s32 3, %v4188_v48 }
 0x1f3   :  { %v358_v24 = vsub.f32 %v338_v15, %v357_v23  ;;  %v359_v25 = vsub.f32 %v3421_v13, %v357_v23  ;;  %v633_v15 = vrot.slane %v4196_v50, %v4227_v10  ;;  %v638_v22 = vrot.slane %v4196_v50, %v4244_v21 }
 0x1f5   :  { %v360_v26 = vmul.f32 1.442695, %v358_v24  ;;  %v362_v27 = vmul.f32 1.442695, %v359_v25 }
 0x1f7   :  { %3844 = vpow2.f32 %v360_v26 }
 0x1f8   :  { %3846 = vpow2.f32 %v362_v27  ;;  %v4252_v27 = vsub.s32 4, %v4188_v48 }
 0x201   :  { %v3845_v28 = vpop.eup %3844 }
 0x202   :  { %v3847_v29 = vpop.eup %3846  ;;  %3424 = vmatprep.mubr.msk.f32.mxu1 %vm347_vm4, %v3845_v28  ;;  %v716_v28 = vrot.slane %v4196_v50, %v4252_v27 }
 0x203   :  { %3425 = vmatmul.mubr.msk.f32.vlgmr.msra.gmra.mrb[2].mxu1 %vm347_vm4, %v3847_v29 }
 0x204   :  { %3431 = vmatprep.mubr.msk.f32.mxu1 %vm3997_vm5, %v3998_v33 }
 0x2d6   :  { %v3426_v34 = vpop.f32.mrb[2].mxu1 }
 0x2d7   :  { %v450_v35 = vmul.f32 %v3426_v34, %v3410_v30  ;;  %v440_v36 = vpop.f32.mrb[3].mxu1 }
 0x2d8   :  { %v449_v37 = vmul.f32 %v440_v36, %v256_v31  ;;  %v3701_v38 = vpack.c.bf16 %v3426_v34, %v440_v36 }
 0x2da   :  { %v3697_v40 = vpack.c.bf16 %v450_v35, %v449_v37 }
 0x2dc   :  { %3699 = vmatpush3.bf16.msk.msra.mxu1 %vm4165_vm7, %v3697_v40 }
 0x2dd   :  { %3700 = vmatprep.subr.bf16.mxu1 %v3996_v32 }
 0x2df   :  { %3432 = vmatmul.mubr.msk.f32.vlgmr.msra.gmra.mrb[4].mxu1 %vm451_vm8, %v4174_v41 }
 0x2e0   :  { %3703 = vmatpush3.bf16.msk.msra.mxu1 %vm4165_vm7, %v3701_v38  ;;  %3438 = vmatprep.mubr.msk.f32.mxu1 %vm3997_vm5, %v3998_v33 }
 0x2e1   :  { %3704 = vmatprep.subr.bf16.mxu1 %v3996_v32 }
 0x2e3   :  { %3439 = vmatmul.mubr.msk.f32.vlgmr.msra.gmra.mrb[6].mxu1 %vm451_vm8, %v4174_v41 }
 0x2e4   :  { %3449 = vmatprep.mubr.msk.f32.mxu1 %vm3997_vm5, %v3998_v33  ;;  %3706 = vmatpush3.bf16.msra.mxu1 %v3705_v63  ;;  %v4266_v63 = vsub.s32 6, %v4188_v48 }
 0x2e5   :  { %3707 = vmatprep.subr.bf16.mxu1 %v3996_v32 }
 0x2e6   :  { %v813_v3 = vrot.slane %v4196_v50, %v4266_v63  ;;  %v3176_v50 = vld [vmem:[%s4612_s8 + $0x38] sm:$0xff] }
 0x2e8   :  { %3709 = vmatpush3.bf16.msra.mxu1 %v3708_v2 }
 0x2e9   :  { %3716 = vmatprep.subr.bf16.mxu1 %v3996_v32 }
 0x3b2   :  { %v524_v42 = vpop.f32.mrb[4].mxu1 }
 0x3b3   :  { %v3433_v43 = vpop.f32.mrb[5].mxu1 }
 0x3b6   :  { %v597_v44 = vpop.f32.mrb[6].mxu1 }
 0x3b7   :  { %vm601_vm9 = vcmp.gt.f32.partialorder %v597_v44, 0.0  ;;  %v3440_v46 = vpop.f32.mrb[7].mxu1 }
 0x3b8   :  { %v602_v47 = vsel %vm601_vm9, %v597_v44, 1.0  ;;  %v816_v44 = vld [vmem:[#allocation5] sm:$0xff] }
 0x3b9   :  { %3848 = vrcp.f32 %v602_v47  ;;  %v820_v46 = vld [vmem:[#allocation7] sm:$0xff]  ;;  %v3717_v47 = vpack.c.bf16 %v817_v45, %v816_v44 }
 0x3c3   :  { %v3849_v52 = vpop.eup %3848 }
 0x3c4   :  { %v604_v53 = vmul.f32 %v3849_v52, %v524_v42  ;;  %v818_v52 = vld [vmem:[#allocation5 + $0x10] sm:$0xff] }
 0x3c6   :  { %v609_v54 = vadd.f32 %v608_v51, %v604_v53  ;;  %v821_v51 = vld [vmem:[#allocation7 + $0x8] sm:$0xff]  ;;  %v819_v53 = vld [vmem:[#allocation5 + $0x18] sm:$0xff] }
 0x3c8   :  { %v611_v55 = vsel %vm610_vm10, %v609_v54, 0.0 }
 0x3c9   :  { %612 = vadd.xlane.f32.xlu0 %v611_v55  ;;  %v822_v55 = vld [vmem:[#allocation7 + $0x10] sm:$0xff] }
 0x456   :  { %v613_v56 = vpop.xlane.xlu0 %612 }
 0x457   :  { %v615_v57 = vmul.f32 0.03125, %v613_v56  ;;  %v823_v56 = vld [vmem:[#allocation7 + $0x18] sm:$0xff] }
 0x459   :  { %v616_v58 = vsub.f32 %v609_v54, %v615_v57  ;;  %v3723_v54 = vpack.c.bf16 %v821_v51, %v820_v46  ;;  %v3720_v57 = vpack.c.bf16 %v819_v53, %v818_v52 }
 0x45b   :  { %v617_v59 = vmul.f32 %v616_v58, %v616_v58 }
 0x45d   :  { %v618_v60 = vsel %vm610_vm10, %v617_v59, 0.0 }
 0x45e   :  { %619 = vadd.xlane.f32.xlu0 %v618_v60 }
 0x4eb   :  { %v620_v6 = vpop.xlane.xlu0 %619 }
 0x4ec   :  { %v621_v7 = vmul.f32 0.03125, %v620_v6  ;;  %v3174_v6 = vld [vmem:[%s4612_s8 + $0x28] sm:$0xff] }
 0x4ed   :  { %v3729_v48 = vpack.c.bf16 %v3174_v6, %v3173_v5 }
 0x4ee   :  { %v622_v8 = vadd.f32 1e-05, %v621_v7 }
 0x4f0   :  { %3850 = vrsqrt.f32 %v622_v8 }
 0x4fa   :  { %v3851_v13 = vpop.eup %3850 }
 0x4fb   :  { %v624_v14 = vmul.f32 %v3851_v13, %v616_v58  ;;  %v3726_v58 = vpack.c.bf16 %v823_v56, %v822_v55 }
 0x4fd   :  { %v629_v16 = vmul.f32 %v628_v11, %v624_v14  ;;  %v3175_v11 = vld [vmem:[%s4612_s8 + $0x30] sm:$0xff] }
 0x4fe   :  { %v3732_v13 = vpack.c.bf16 %v3176_v50, %v3175_v11  ;;  %v3179_v50 = vld [vmem:[%s4613_s9 + $0x30] sm:$0xff] }
 0x4ff   :  { %v634_v17 = vadd.f32 %v633_v15, %v629_v16 }
 0x501   :  { %3450 = vmatmul.mubr.msk.f32.vlgmr.msra.gmra.mrb[8].mxu1 %vm265_vm1, %v634_v17 }
 0x502   :  { %3471 = vmatprep.mubr.msk.f32.mxu1 %vm3997_vm5, %v3998_v33  ;;  %3718 = vmatpush3.bf16.msra.mxu1 %v3717_v47  ;;  %v4321_v47 = vld [vmem:[%s4615_s11 + $0x8] sm:$0xff] }
 0x503   :  { %3719 = vmatprep.subr.bf16.mxu1 %v3996_v32  ;;  %v1317_v51 = vrot.slane %v4321_v47, %v4191_v49 }
 0x506   :  { %3721 = vmatpush3.bf16.msra.mxu1 %v3720_v57 }
 0x507   :  { %3728 = vmatprep.subr.bf16.mxu1 %v3996_v32 }
 0x5d4   :  { %v708_v23 = vpop.f32.mrb[8].mxu1 }
 0x5d5   :  { %v709_v24 = vadd.f32 %v708_v23, %v638_v22  ;;  %v3451_v25 = vpop.f32.mrb[9].mxu1 }
 0x5d7   :  { %v712_v26 = vmax.f32 %v709_v24, 0.0 }
 0x5d9   :  { %3461 = vmatmul.mubr.msk.f32.vlgmr.msra.gmra.mrb[4].mxu0 %vm265_vm1, %v712_v26 }
 0x5da   :  { %3482 = vmatprep.mubr.msk.f32.mxu0 %vm3997_vm5, %v3998_v33  ;;  %3724 = vmatpush3.bf16.msra.mxu0 %v3723_v54 }
 0x5db   :  { %3725 = vmatprep.subr.bf16.mxu0 %v3996_v32 }
 0x5de   :  { %3727 = vmatpush3.bf16.msra.mxu0 %v3726_v58 }
 0x5df   :  { %3496 = vmatprep.subr.mxu0 %v3998_v33 }
 0x6ac   :  { %v786_v29 = vpop.f32.mrb[4].mxu0 }
 0x6ad   :  { %v787_v30 = vadd.f32 %v786_v29, %v716_v28  ;;  %v3462_v31 = vpop.f32.mrb[5].mxu0 }
 0x6af   :  { %v790_v34 = vmax.f32 %v787_v30, 0.0 }
 0x6b1   :  { %v791_v35 = vadd.f32 %v790_v34, %v634_v17  ;;  %v4299_v34 = vld [vmem:[%s4606_s2] sm:$0xff] }
 0x6b3   :  { %v792_v36 = vsel %vm610_vm10, %v791_v35, 0.0 }
 0x6b4   :  { %793 = vadd.xlane.f32.xlu1 %v792_v36  ;;  %v4308_v36 = vld [vmem:[%s4606_s2 + $0x8] sm:$0xf] }
 0x741   :  { %v794_v37 = vpop.xlane.xlu1 %793 }
 0x742   :  { %v795_v38 = vmul.f32 0.03125, %v794_v37 }
 0x744   :  { %v796_v40 = vsub.f32 %v791_v35, %v795_v38 }
 0x746   :  { %v797_v42 = vmul.f32 %v796_v40, %v796_v40 }
 0x748   :  { %v798_v43 = vsel %vm610_vm10, %v797_v42, 0.0 }
 0x749   :  { %799 = vadd.xlane.f32.xlu1 %v798_v43 }
 0x7d6   :  { %v800_v59 = vpop.xlane.xlu1 %799 }
 0x7d7   :  { %v801_v60 = vmul.f32 0.03125, %v800_v59 }
 0x7d9   :  { %v802_v61 = vadd.f32 1e-05, %v801_v60 }
 0x7db   :  { %3852 = vrsqrt.f32 %v802_v61 }
 0x7e5   :  { %v3853_v1 = vpop.eup %3852 }
 0x7e6   :  { %v804_v2 = vmul.f32 %v3853_v1, %v796_v40 }
 0x7e8   :  { %v809_v4 = vmul.f32 %v808_v0, %v804_v2 }
 0x7ea   :  { %v814_v7 = vadd.f32 %v813_v3, %v809_v4 }
 0x7ec   :  { %v815_v8 = vmax.f32 %v814_v7, 0.0 }
 0x7ee   :  { %3472 = vmatmul.mubr.msk.f32.vlgmr.msra.gmra.mrb[10].mxu1 %vm265_vm1, %v815_v8  ;;  %3483 = vmatmul.mubr.msk.f32.vlgmr.msra.gmra.mrb[6].mxu0 %vm265_vm1, %v815_v8  ;;  %v3178_v8 = vld [vmem:[%s4613_s9 + $0x28] sm:$0xff] }
 0x7ef   :  { %3730 = vmatpush3.bf16.msra.mxu1 %v3729_v48  ;;  %3493 = vmatprep.mubr.msk.f32.mxu1 %vm3997_vm5, %v3998_v33  ;;  %v3177_v48 = vld [vmem:[%s4613_s9 + $0x20] sm:$0xff] }
 0x7f0   :  { %3731 = vmatprep.subr.bf16.mxu1 %v3996_v32  ;;  %3497 = vmatpush3.msk.msra.mxu0 %vm370_vm2, %v4147_v12  ;;  %v3734_v11 = vpack.c.bf16 %v3178_v8, %v3177_v48 }
 0x7f1   :  { %3498 = vmatprep.mubr.msk.f32.mxu0 %vm3997_vm5, %v3998_v33 }
 0x7f3   :  { %3733 = vmatpush3.bf16.msra.mxu1 %v3732_v13  ;;  %v3180_v13 = vld [vmem:[%s4613_s9 + $0x38] sm:$0xff] }
 0x8c1   :  { %v910_v14 = vpop.f32.mrb[10].mxu1  ;;  %v980_v15 = vpop.f32.mrb[6].mxu0 }
 0x8c2   :  { %v3473_v16 = vpop.f32.mrb[11].mxu1  ;;  %v3484_v17 = vpop.f32.mrb[7].mxu0  ;;  %3494 = vmatmul.mubr.msk.f32.vlgmr.msra.gmra.mrb[12].mxu1 %vm265_vm1, %v910_v14  ;;  %v3738_v14 = vpack.c.bf16 %v3180_v13, %v3179_v50 }
 0x8c3   :  { %3508 = vmatprep.mubr.msk.f32.mxu1 %vm1142_vm12, %v4299_v34  ;;  %v3182_v16 = vld [vmem:[%s4614_s10 + $0x28] sm:$0xff] }
 0x995   :  { %v1053_v18 = vpop.f32.mrb[12].mxu1 }
 0x996   :  { %v1058_v19 = vsel %vm1057_vm11, %v1053_v18, -inf  ;;  %v3495_v20 = vpop.f32.mrb[13].mxu1 }
 0x997   :  { %v1059_v22 = vrot.slane %v1058_v19, 4 }
 0x999   :  { %v1060_v23 = vmax.f32 %v1058_v19, %v1059_v22 }
 0x99b   :  { %v1061_v24 = vrot.slane %v1060_v23, 2 }
 0x99d   :  { %v1062_v25 = vmax.f32 %v1060_v23, %v1061_v24 }
 0x99f   :  { %v1063_v26 = vrot.slane %v1062_v25, 1 }
 0x9a1   :  { %v1064_v28 = vmax.f32 %v1062_v25, %v1063_v26  ;;  %v1350_v25 = vrot.slane %v4321_v47, %v4224_v9 }
 0x9a3   :  { %v1065_v29 = vsub.f32 %v1053_v18, %v1064_v28 }
 0x9a5   :  { %v1066_v30 = vmul.f32 1.442695, %v1065_v29 }
 0x9a7   :  { %3854 = vpow2.f32 %v1066_v30 }
 0x9b1   :  { %v3855_v31 = vpop.eup %3854 }
 0x9b2   :  { %3499 = vmatmul.mubr.msk.f32.vlgmr.msra.gmra.mrb[8].mxu0 %vm347_vm4, %v3855_v31  ;;  %v1356_v31 = vrot.slane %v4321_v47, %v4227_v10 }
 0x9b3   :  { %3503 = vmatprep.mubr.msk.f32.mxu0 %vm1142_vm12, %v4299_v34 }
 0xa85   :  { %v1137_v35 = vpop.f32.mrb[8].mxu0 }
 0xa86   :  { %v1141_v37 = vmul.f32 %v1137_v35, %v980_v15  ;;  %v3500_v38 = vpop.f32.mrb[9].mxu0  ;;  %3506 = vmatprep.subr.msk.mxu1 %vm1149_vm13, %v1137_v35  ;;  %v3181_v15 = vld [vmem:[%s4614_s10 + $0x20] sm:$0xff] }
 0xa87   :  { %3507 = vmatpush3.msk.msra.mxu1 %vm1149_vm13, %v1137_v35  ;;  %v3742_v17 = vpack.c.bf16 %v3182_v16, %v3181_v15  ;;  %v1576_v16 = vld [vmem:[#allocation5 + $0x20] sm:$0xff] }
 0xa88   :  { %3501 = vmatprep.subr.msk.mxu0 %vm1149_vm13, %v1141_v37  ;;  %3509 = vmatmul.mubr.msk.f32.vlgmr.msra.gmra.mrb[14].mxu1 %vm1142_vm12, %v4308_v36 }
 0xa89   :  { %3502 = vmatpush3.msk.msra.mxu0 %vm1149_vm13, %v1141_v37  ;;  %3743 = vmatprep.subr.bf16.mxu1 %v3742_v17 }
 0xa8a   :  { %3504 = vmatmul.mubr.msk.f32.vlgmr.msra.gmra.mrb[10].mxu0 %vm1142_vm12, %v4308_v36  ;;  %3735 = vmatprep.subr.bf16.mxu0 %v3734_v11 }
 0xa8b   :  { %3737 = vmatpush3.bf16.msra.mxu0 %v3734_v11  ;;  %3745 = vmatpush3.bf16.msra.mxu1 %v3742_v17  ;;  %v1577_v17 = vld [vmem:[#allocation5 + $0x28] sm:$0xff] }
 0xa8c   :  { %3739 = vmatprep.subr.bf16.mxu0 %v3738_v14 }
 0xa8f   :  { %3741 = vmatpush3.bf16.msra.mxu0 %v3738_v14 }
 0xb5b   :  { %v3510_v40 = vpop.f32.mrb[14].mxu1 }
 0xb5c   :  { %vm1307_vm14 = vcmp.gt.f32.partialorder %v3510_v40, 0.0  ;;  %v1297_v42 = vpop.f32.mrb[15].mxu1 }
 0xb5d   :  { %v1309_v43 = vsel %vm1307_vm14, %v3510_v40, 1.0  ;;  %vm1306_vm15 = vcmp.gt.f32.partialorder %v1297_v42, 0.0  ;;  %v3505_v44 = vpop.f32.mrb[10].mxu0 }
 0xb5e   :  { %3856 = vrcp.f32 %v1309_v43  ;;  %v1308_v45 = vsel %vm1306_vm15, %v1297_v42, 1.0  ;;  %v1219_v46 = vpop.f32.mrb[11].mxu0  ;;  %v3183_v42 = vld [vmem:[%s4614_s10 + $0x30] sm:$0xff]  ;;  %v3184_v43 = vld [vmem:[%s4614_s10 + $0x38] sm:$0xff] }
 0xb5f   :  { %3858 = vrcp.f32 %v1308_v45  ;;  %v1362_v45 = vrot.slane %v4321_v47, %v4244_v21 }
 0xb68   :  { %v3857_v52 = vpop.eup %3856 }
 0xb69   :  { %v3859_v53 = vpop.eup %3858  ;;  %v1313_v54 = vmul.f32 %v3857_v52, %v3505_v44  ;;  %v3746_v44 = vpack.c.bf16 %v3184_v43, %v3183_v42 }
 0xb6a   :  { %v1312_v55 = vmul.f32 %v3859_v53, %v1219_v46 }
 0xb6b   :  { %v1319_v56 = vadd.f32 %v1317_v51, %v1313_v54  ;;  %3747 = vmatprep.subr.bf16.mxu1 %v3746_v44 }
 0xb6c   :  { %v1318_v57 = vadd.f32 %v1317_v51, %v1312_v55  ;;  %3749 = vmatpush3.bf16.msra.mxu1 %v3746_v44 }
 0xb6d   :  { %v1324_v58 = vsel %vm1323_vm0, %v1319_v56, 0.0 }
 0xb6e   :  { %1325 = vadd.xlane.f32.xlu1 %v1324_v58  ;;  %v1320_v59 = vsel %vm265_vm1, %v1318_v57, 0.0 }
 0xb6f   :  { %1321 = vadd.xlane.f32.xlu0 %v1320_v59 }
 0xbfb   :  { %v1326_v60 = vpop.xlane.xlu1 %1325 }
 0xbfc   :  { %v1328_v61 = vmul.f32 0.03125, %v1326_v60  ;;  %v1322_v0 = vpop.xlane.xlu0 %1321 }
 0xbfd   :  { %v1327_v1 = vmul.f32 0.03125, %v1322_v0 }
 0xbfe   :  { %v1330_v2 = vsub.f32 %v1319_v56, %v1328_v61  ;;  %v1449_v56 = vrot.slane %v4321_v47, %v4252_v27 }
 0xbff   :  { %v1329_v3 = vsub.f32 %v1318_v57, %v1327_v1 }
 0xc00   :  { %v1332_v4 = vmul.f32 %v1330_v2, %v1330_v2 }
 0xc01   :  { %v1331_v5 = vmul.f32 %v1329_v3, %v1329_v3 }
 0xc02   :  { %v1336_v6 = vsel %vm1323_vm0, %v1332_v4, 0.0 }
 0xc03   :  { %1337 = vadd.xlane.f32.xlu1 %v1336_v6  ;;  %v1333_v7 = vsel %vm265_vm1, %v1331_v5, 0.0 }
 0xc04   :  { %1334 = vadd.xlane.f32.xlu0 %v1333_v7 }
 0xc90   :  { %v1338_v18 = vpop.xlane.xlu1 %1337 }
 0xc91   :  { %v1340_v19 = vmul.f32 0.03125, %v1338_v18  ;;  %v1335_v20 = vpop.xlane.xlu0 %1334  ;;  %v1581_v18 = vld [vmem:[#allocation7 + $0x20] sm:$0xff] }
 0xc92   :  { %v1339_v22 = vmul.f32 0.03125, %v1335_v20  ;;  %v1582_v20 = vld [vmem:[#allocation7 + $0x28] sm:$0xff] }
 0xc93   :  { %v1342_v23 = vadd.f32 1e-05, %v1340_v19  ;;  %v3750_v19 = vpack.c.bf16 %v1577_v17, %v1576_v16 }
 0xc94   :  { %v1341_v24 = vadd.f32 1e-05, %v1339_v22  ;;  %v1578_v22 = vld [vmem:[#allocation5 + $0x30] sm:$0xff] }
 0xc95   :  { %3860 = vrsqrt.f32 %v1342_v23  ;;  %v1579_v23 = vld [vmem:[#allocation5 + $0x38] sm:$0xff]  ;;  %3751 = vmatprep.subr.bf16.mxu0 %v3750_v19 }
 0xc96   :  { %3862 = vrsqrt.f32 %v1341_v24  ;;  %v3758_v24 = vpack.c.bf16 %v1582_v20, %v1581_v18 }
 0xc98   :  { %3759 = vmatprep.subr.bf16.mxu1 %v3758_v24 }
 0xc9f   :  { %v3861_v26 = vpop.eup %3860 }
 0xca0   :  { %v3863_v28 = vpop.eup %3862  ;;  %v1346_v29 = vmul.f32 %v3861_v26, %v1330_v2  ;;  %v1583_v26 = vld [vmem:[#allocation7 + $0x30] sm:$0xff] }
 0xca1   :  { %v1345_v30 = vmul.f32 %v3863_v28, %v1329_v3  ;;  %v1584_v28 = vld [vmem:[#allocation7 + $0x38] sm:$0xff] }
 0xca2   :  { %v1352_v35 = vmul.f32 %v1350_v25, %v1346_v29  ;;  %v3762_v29 = vpack.c.bf16 %v1584_v28, %v1583_v26 }
 0xca3   :  { %v1351_v37 = vmul.f32 %v1350_v25, %v1345_v30  ;;  %v3754_v25 = vpack.c.bf16 %v1579_v23, %v1578_v22  ;;  %v3201_v30 = vld [vmem:[%s4612_s8 + $0x40] sm:$0xff] }
 0xca4   :  { %v1358_v40 = vadd.f32 %v1356_v31, %v1352_v35 }
 0xca5   :  { %v1357_v38 = vadd.f32 %v1356_v31, %v1351_v37  ;;  %v3202_v31 = vld [vmem:[%s4612_s8 + $0x48] sm:$0xff] }
 0xca6   :  { %v3766_v35 = vpack.c.bf16 %v3202_v31, %v3201_v30 }
 0xca7   :  { %3519 = vmatprep.mubr.msk.f32.mxu0 %vm265_vm1, %v1357_v38 }
 0xca8   :  { %3520 = vmatmul.mubr.msk.f32.vlgmr.msra.gmra.mrb[12].mxu0 %vm265_vm1, %v1358_v40 }
 0xca9   :  { %3753 = vmatpush3.bf16.msra.mxu0 %v3750_v19 }
 0xcaa   :  { %3755 = vmatprep.subr.bf16.mxu0 %v3754_v25 }
 0xcad   :  { %3757 = vmatpush3.bf16.msra.mxu0 %v3754_v25 }
 0xcae   :  { %3767 = vmatprep.subr.bf16.mxu0 %v3766_v35 }
 0xd7b   :  { %v3521_v46 = vpop.f32.mrb[12].mxu0 }
 0xd7c   :  { %v1441_v51 = vadd.f32 %v3521_v46, %v1362_v45  ;;  %v1435_v52 = vpop.f32.mrb[13].mxu0 }
 0xd7d   :  { %v1436_v53 = vadd.f32 %v1435_v52, %v1362_v45  ;;  %v1564_v45 = vrot.slane %v4321_v47, %v4263_v62 }
 0xd7e   :  { %v1445_v55 = vmax.f32 %v1441_v51, 0.0 }
 0xd7f   :  { %v1444_v54 = vmax.f32 %v1436_v53, 0.0  ;;  %v1570_v53 = vrot.slane %v4321_v47, %v4266_v63 }
 0xd81   :  { %3530 = vmatprep.mubr.msk.f32.mxu1 %vm265_vm1, %v1444_v54 }
 0xd82   :  { %3531 = vmatmul.mubr.msk.f32.vlgmr.msra.gmra.mrb[16].mxu1 %vm265_vm1, %v1445_v55 }
 0xd83   :  { %3761 = vmatpush3.bf16.msra.mxu1 %v3758_v24 }
 0xd84   :  { %3763 = vmatprep.subr.bf16.mxu1 %v3762_v29 }
 0xd87   :  { %3765 = vmatpush3.bf16.msra.mxu1 %v3762_v29 }
 0xd88   :  { %3566 = vmatprep.subr.msk.mxu1 %vm370_vm2, %v4147_v12 }
 0xe55   :  { %v3532_v57 = vpop.f32.mrb[16].mxu1 }
 0xe56   :  { %v1528_v58 = vadd.f32 %v3532_v57, %v1449_v56  ;;  %v1522_v59 = vpop.f32.mrb[17].mxu1 }
 0xe57   :  { %v1523_v60 = vadd.f32 %v1522_v59, %v1449_v56  ;;  %v3203_v59 = vld [vmem:[%s4612_s8 + $0x50] sm:$0xff] }
 0xe58   :  { %v1532_v61 = vmax.f32 %v1528_v58, 0.0 }
 0xe59   :  { %v1531_v0 = vmax.f32 %v1523_v60, 0.0  ;;  %v3204_v60 = vld [vmem:[%s4612_s8 + $0x58] sm:$0xff] }
 0xe5a   :  { %v1534_v1 = vadd.f32 %v1532_v61, %v1358_v40 }
 0xe5b   :  { %v1533_v2 = vadd.f32 %v1531_v0, %v1357_v38 }
 0xe5c   :  { %v1538_v3 = vsel %vm1323_vm0, %v1534_v1, 0.0 }
 0xe5d   :  { %1539 = vadd.xlane.f32.xlu1 %v1538_v3  ;;  %v1535_v4 = vsel %vm265_vm1, %v1533_v2, 0.0 }
 0xe5e   :  { %1536 = vadd.xlane.f32.xlu0 %v1535_v4 }
 0xeea   :  { %v1540_v5 = vpop.xlane.xlu1 %1539 }
 0xeeb   :  { %v1542_v6 = vmul.f32 0.03125, %v1540_v5  ;;  %v1537_v7 = vpop.xlane.xlu0 %1536 }
 0xeec   :  { %v1541_v48 = vmul.f32 0.03125, %v1537_v7 }
 0xeed   :  { %v1544_v8 = vsub.f32 %v1534_v1, %v1542_v6  ;;  %v3770_v1 = vpack.c.bf16 %v3204_v60, %v3203_v59  ;;  %v3209_v60 = vld [vmem:[%s4614_s10 + $0x40] sm:$0xff] }
 0xeee   :  { %v1543_v11 = vsub.f32 %v1533_v2, %v1541_v48 }
 0xeef   :  { %v1546_v50 = vmul.f32 %v1544_v8, %v1544_v8 }
 0xef0   :  { %v1545_v13 = vmul.f32 %v1543_v11, %v1543_v11 }
 0xef1   :  { %v1550_v14 = vsel %vm1323_vm0, %v1546_v50, 0.0 }
 0xef2   :  { %1551 = vadd.xlane.f32.xlu1 %v1550_v14  ;;  %v1547_v15 = vsel %vm265_vm1, %v1545_v13, 0.0 }
 0xef3   :  { %1548 = vadd.xlane.f32.xlu0 %v1547_v15 }
 0xf7f   :  { %v1552_v37 = vpop.xlane.xlu1 %1551 }
 0xf80   :  { %v1554_v38 = vmul.f32 0.03125, %v1552_v37  ;;  %v1549_v40 = vpop.xlane.xlu0 %1548 }
 0xf81   :  { %v1553_v42 = vmul.f32 0.03125, %v1549_v40 }
 0xf82   :  { %v1556_v43 = vadd.f32 1e-05, %v1554_v38  ;;  %v4422_v38 = vld [vmem:[%s4615_s11 + $0x10] sm:$0xff] }
 0xf83   :  { %v1555_v44 = vadd.f32 1e-05, %v1553_v42  ;;  %v2090_v40 = vrot.slane %v4422_v38, %v4191_v49 }
 0xf84   :  { %3864 = vrsqrt.f32 %v1556_v43 }
 0xf85   :  { %3866 = vrsqrt.f32 %v1555_v44 }
 0xf8e   :  { %v3865_v46 = vpop.eup %3864 }
 0xf8f   :  { %v3867_v51 = vpop.eup %3866  ;;  %v1560_v52 = vmul.f32 %v3865_v46, %v1544_v8 }
 0xf90   :  { %v1559_v54 = vmul.f32 %v3867_v51, %v1543_v11 }
 0xf91   :  { %v1566_v55 = vmul.f32 %v1564_v45, %v1560_v52 }
 0xf92   :  { %v1565_v56 = vmul.f32 %v1564_v45, %v1559_v54  ;;  %v3205_v54 = vld [vmem:[%s4613_s9 + $0x40] sm:$0xff] }
 0xf93   :  { %v1572_v57 = vadd.f32 %v1570_v53, %v1566_v55  ;;  %v3206_v55 = vld [vmem:[%s4613_s9 + $0x48] sm:$0xff] }
 0xf94   :  { %v1571_v58 = vadd.f32 %v1570_v53, %v1565_v56  ;;  %v3783_v56 = vpack.c.bf16 %v3206_v55, %v3205_v54  ;;  %v2288_v55 = vrot.slane %v4422_v38, %v4263_v62 }
 0xf95   :  { %v1574_v0 = vmax.f32 %v1572_v57, 0.0  ;;  %v3207_v57 = vld [vmem:[%s4613_s9 + $0x50] sm:$0xff] }
 0xf96   :  { %v1573_v61 = vmax.f32 %v1571_v58, 0.0  ;;  %v3208_v58 = vld [vmem:[%s4613_s9 + $0x58] sm:$0xff] }
 0xf97   :  { %v3786_v59 = vpack.c.bf16 %v3208_v58, %v3207_v57  ;;  %v2293_v58 = vrot.slane %v4422_v38, %v4266_v63 }
 0xf98   :  { %3541 = vmatprep.mubr.msk.f32.mxu0 %vm265_vm1, %v1573_v61  ;;  %3552 = vmatprep.mubr.msk.f32.mxu1 %vm265_vm1, %v1573_v61  ;;  %v3210_v61 = vld [vmem:[%s4614_s10 + $0x48] sm:$0xff] }
 0xf99   :  { %3542 = vmatmul.mubr.msk.f32.vlgmr.msra.gmra.mrb[14].mxu0 %vm265_vm1, %v1574_v0  ;;  %3553 = vmatmul.mubr.msk.f32.vlgmr.msra.gmra.mrb[18].mxu1 %vm265_vm1, %v1574_v0  ;;  %v3789_v0 = vpack.c.bf16 %v3210_v61, %v3209_v60  ;;  %v3229_v60 = vld [vmem:[%s4612_s8 + $0x60] sm:$0xff]  ;;  %v3230_v61 = vld [vmem:[%s4612_s8 + $0x68] sm:$0xff] }
 0xf9a   :  { %3769 = vmatpush3.bf16.msra.mxu0 %v3766_v35  ;;  %3567 = vmatpush3.msk.msra.mxu1 %vm370_vm2, %v4147_v12 }
 0xf9b   :  { %3771 = vmatprep.subr.bf16.mxu0 %v3770_v1  ;;  %3774 = vmatprep.subr.bf16.mxu1 %v3996_v32 }
 0xf9e   :  { %3773 = vmatpush3.bf16.msra.mxu0 %v3770_v1 }
 0xf9f   :  { %3778 = vmatprep.subr.bf16.mxu0 %v3996_v32 }
0x106c   :  { %v3543_v47 = vpop.f32.mrb[14].mxu0  ;;  %v3554_v2 = vpop.f32.mrb[18].mxu1 }
0x106d   :  { %v1674_v3 = vpop.f32.mrb[15].mxu0  ;;  %v1749_v4 = vpop.f32.mrb[19].mxu1 }
0x106e   :  { %3563 = vmatprep.mubr.msk.f32.mxu0 %vm265_vm1, %v1674_v3  ;;  %v2108_v3 = vrot.slane %v4422_v38, %v4224_v9 }
0x106f   :  { %3564 = vmatmul.mubr.msk.f32.vlgmr.msra.gmra.mrb[16].mxu0 %vm265_vm1, %v3543_v47 }
0x1070   :  { %3582 = vmatprep.mubr.msk.f32.mxu0 %vm3997_vm5, %v3998_v33 }
0x1142   :  { %v3565_v5 = vpop.f32.mrb[16].mxu0 }
0x1143   :  { %v1840_v12 = vsel %vm349_vm3, %v3565_v5, -inf  ;;  %v1830_v6 = vpop.f32.mrb[17].mxu0 }
0x1144   :  { %v1839_v7 = vsel %vm347_vm4, %v1830_v6, -inf }
0x1145   :  { %v1841_v48 = vmax.f32 %v1839_v7, %v1840_v12  ;;  %v2113_v12 = vrot.slane %v4422_v38, %v4227_v10 }
0x1147   :  { %v1842_v8 = vrot.slane %v1841_v48, 4 }
0x1149   :  { %v1843_v11 = vmax.f32 %v1841_v48, %v1842_v8  ;;  %v3211_v48 = vld [vmem:[%s4614_s10 + $0x50] sm:$0xff]  ;;  %v3212_v8 = vld [vmem:[%s4614_s10 + $0x58] sm:$0xff] }
0x114b   :  { %v1844_v50 = vrot.slane %v1843_v11, 2 }
0x114d   :  { %v1845_v13 = vmax.f32 %v1843_v11, %v1844_v50  ;;  %v3792_v11 = vpack.c.bf16 %v3212_v8, %v3211_v48  ;;  %v2118_v50 = vrot.slane %v4422_v38, %v4244_v21 }
0x114f   :  { %v1846_v14 = vrot.slane %v1845_v13, 1 }
0x1151   :  { %v1847_v15 = vmax.f32 %v1845_v13, %v1846_v14 }
0x1153   :  { %v1848_v16 = vsub.f32 %v1830_v6, %v1847_v15  ;;  %v1849_v17 = vsub.f32 %v3565_v5, %v1847_v15 }
0x1155   :  { %v1850_v18 = vmul.f32 1.442695, %v1848_v16  ;;  %v1852_v19 = vmul.f32 1.442695, %v1849_v17  ;;  %v2196_v17 = vrot.slane %v4422_v38, %v4252_v27  ;;  %v3232_v38 = vld [vmem:[%s4612_s8 + $0x78] sm:$0xff] }
0x1157   :  { %3868 = vpow2.f32 %v1850_v18 }
0x1158   :  { %3870 = vpow2.f32 %v1852_v19 }
0x1161   :  { %v3869_v20 = vpop.eup %3868 }
0x1162   :  { %v3871_v22 = vpop.eup %3870  ;;  %3568 = vmatprep.mubr.msk.f32.mxu1 %vm347_vm4, %v3869_v20 }
0x1163   :  { %3569 = vmatmul.mubr.msk.f32.vlgmr.msra.gmra.mrb[20].mxu1 %vm347_vm4, %v3871_v22 }
0x1164   :  { %3575 = vmatprep.mubr.msk.f32.mxu1 %vm3997_vm5, %v3998_v33 }
0x1236   :  { %v3570_v23 = vpop.f32.mrb[20].mxu1 }
0x1237   :  { %v1936_v24 = vmul.f32 %v3570_v23, %v3554_v2  ;;  %v1926_v25 = vpop.f32.mrb[21].mxu1 }
0x1238   :  { %v1935_v26 = vmul.f32 %v1926_v25, %v1749_v4  ;;  %v3779_v28 = vpack.c.bf16 %v3570_v23, %v1926_v25 }
0x123a   :  { %v3775_v29 = vpack.c.bf16 %v1936_v24, %v1935_v26  ;;  %3781 = vmatpush3.bf16.msk.msra.mxu0 %vm4165_vm7, %v3779_v28 }
0x123b   :  { %3788 = vmatprep.subr.bf16.mxu0 %v3996_v32 }
0x123c   :  { %3777 = vmatpush3.bf16.msk.msra.mxu1 %vm4165_vm7, %v3775_v29 }
0x123d   :  { %3583 = vmatmul.mubr.msk.f32.vlgmr.msra.gmra.mrb[18].mxu0 %vm451_vm8, %v4174_v41  ;;  %3782 = vmatprep.subr.bf16.mxu1 %v3996_v32 }
0x123e   :  { %3604 = vmatprep.mubr.msk.f32.mxu0 %vm3997_vm5, %v3998_v33  ;;  %3790 = vmatpush3.bf16.msra.mxu0 %v3789_v0 }
0x123f   :  { %3576 = vmatmul.mubr.msk.f32.vlgmr.msra.gmra.mrb[22].mxu1 %vm451_vm8, %v4174_v41  ;;  %3791 = vmatprep.subr.bf16.mxu0 %v3996_v32 }
0x1240   :  { %3593 = vmatprep.mubr.msk.f32.mxu1 %vm3997_vm5, %v3998_v33  ;;  %3784 = vmatpush3.bf16.msra.mxu1 %v3783_v56 }
0x1241   :  { %3785 = vmatprep.subr.bf16.mxu1 %v3996_v32 }
0x1242   :  { %3793 = vmatpush3.bf16.msra.mxu0 %v3792_v11 }
0x1243   :  { %3800 = vmatprep.subr.bf16.mxu0 %v3996_v32 }
0x1244   :  { %3787 = vmatpush3.bf16.msra.mxu1 %v3786_v59 }
0x1245   :  { %3794 = vmatprep.subr.bf16.mxu1 %v3996_v32 }
0x1310   :  { %v2079_v30 = vpop.f32.mrb[18].mxu0 }
0x1311   :  { %vm2083_vm3 = vcmp.gt.f32.partialorder %v2079_v30, 0.0  ;;  %v3584_v31 = vpop.f32.mrb[19].mxu0 }
0x1312   :  { %v2084_v35 = vsel %vm2083_vm3, %v2079_v30, 1.0  ;;  %v2006_v39 = vpop.f32.mrb[22].mxu1  ;;  %v2297_v31 = vld [vmem:[#allocation5 + $0x40] sm:$0xff] }
0x1313   :  { %3872 = vrcp.f32 %v2084_v35  ;;  %v3577_v37 = vpop.f32.mrb[23].mxu1  ;;  %v2298_v35 = vld [vmem:[#allocation5 + $0x48] sm:$0xff] }
0x1314   :  { %v3795_v37 = vpack.c.bf16 %v2298_v35, %v2297_v31  ;;  %v4518_v31 = vld [vmem:[%s4615_s11 + $0x18] sm:$0xff] }
0x1315   :  { %v2790_v35 = vrot.slane %v4518_v31, %v4191_v49 }
0x131d   :  { %v3873_v42 = vpop.eup %3872 }
0x131e   :  { %v2086_v41 = vmul.f32 %v3873_v42, %v2006_v39  ;;  %v2302_v39 = vld [vmem:[#allocation7 + $0x40] sm:$0xff]  ;;  %v2299_v42 = vld [vmem:[#allocation5 + $0x50] sm:$0xff] }
0x1320   :  { %v2091_v43 = vadd.f32 %v2090_v40, %v2086_v41  ;;  %v2303_v40 = vld [vmem:[#allocation7 + $0x48] sm:$0xff]  ;;  %v2300_v41 = vld [vmem:[#allocation5 + $0x58] sm:$0xff] }
0x1322   :  { %v2092_v44 = vsel %vm610_vm10, %v2091_v43, 0.0 }
0x1323   :  { %2093 = vadd.xlane.f32.xlu0 %v2092_v44  ;;  %v2304_v44 = vld [vmem:[#allocation7 + $0x50] sm:$0xff] }
0x13b0   :  { %v2094_v45 = vpop.xlane.xlu0 %2093 }
0x13b1   :  { %v2095_v46 = vmul.f32 0.03125, %v2094_v45  ;;  %v2305_v45 = vld [vmem:[#allocation7 + $0x58] sm:$0xff] }
0x13b3   :  { %v2096_v51 = vsub.f32 %v2091_v43, %v2095_v46  ;;  %v3801_v43 = vpack.c.bf16 %v2303_v40, %v2302_v39  ;;  %v3798_v46 = vpack.c.bf16 %v2300_v41, %v2299_v42 }
0x13b5   :  { %v2097_v52 = vmul.f32 %v2096_v51, %v2096_v51 }
0x13b7   :  { %v2098_v53 = vsel %vm610_vm10, %v2097_v52, 0.0 }
0x13b8   :  { %2099 = vadd.xlane.f32.xlu1 %v2098_v53 }
0x1445   :  { %v2100_v1 = vpop.xlane.xlu1 %2099 }
0x1446   :  { %v2101_v47 = vmul.f32 0.03125, %v2100_v1  ;;  %v3807_v1 = vpack.c.bf16 %v3230_v61, %v3229_v60  ;;  %v3235_v61 = vld [vmem:[%s4613_s9 + $0x70] sm:$0xff] }
0x1448   :  { %v2102_v2 = vadd.f32 1e-05, %v2101_v47 }
0x144a   :  { %3874 = vrsqrt.f32 %v2102_v2  ;;  %v3231_v2 = vld [vmem:[%s4612_s8 + $0x70] sm:$0xff]  ;;  %s3148_s8 = sshll.u32 %s4000_s25, 4  ;;  %s3149_s8 = int_to_ptr.vmem [resolvable:$true] %s3148_s8 }
0x144b   :  { %s3963_s26 = scalar_lea.vmem %s3149_s8, 16  ;;  %s3967_s11 = scalar_lea.vmem %s3149_s8, 32 }
0x144c   :  { %p3964_p10 = scmp.ne.s32.totalorder %s3149_s8, %s3963_s26  ;;  %p3968_p11 = scmp.lt.s32.totalorder %s3149_s8, %s3149_s8 }
0x144d   :  { %p3969_p12 = scmp.lt.s32.totalorder %s3967_s11, %s3963_s26 }
0x144f   :  { %p3970_p13 = por %p3969_p12, %p3968_p11 }
0x1451   :  { %p3971_p0 = pnand %p3970_p13, %p3964_p10 }
0x1454   :  { %v3875_v4 = vpop.eup %3874 }
0x1455   :  { %v2104_v5 = vmul.f32 %v3875_v4, %v2096_v51  ;;  %v3804_v51 = vpack.c.bf16 %v2305_v45, %v2304_v44  ;;  %v3896_v4 = vld [vmem:[#allocation2] sm:$0xf] }
0x1457   :  { %v2109_v6 = vmul.f32 %v2108_v3, %v2104_v5  ;;  %v3810_v3 = vpack.c.bf16 %v3232_v38, %v3231_v2  ;;  %v3238_v2 = vld [vmem:[%s4614_s10 + $0x68] sm:$0xff] }
0x1459   :  { %v2114_v7 = vadd.f32 %v2113_v12, %v2109_v6 }
0x145b   :  { %3594 = vmatmul.mubr.msk.f32.vlgmr.msra.gmra.mrb[24].mxu1 %vm265_vm1, %v2114_v7 }
0x145c   :  { %3615 = vmatprep.mubr.msk.f32.mxu1 %vm3997_vm5, %v3998_v33  ;;  %3796 = vmatpush3.bf16.msra.mxu1 %v3795_v37 }
0x145d   :  { %3797 = vmatprep.subr.bf16.mxu1 %v3996_v32 }
0x1460   :  { %3799 = vmatpush3.bf16.msra.mxu1 %v3798_v46 }
0x1461   :  { %3806 = vmatprep.subr.bf16.mxu1 %v3996_v32 }
0x152e   :  { %v2188_v13 = vpop.f32.mrb[24].mxu1 }
0x152f   :  { %v2189_v14 = vadd.f32 %v2188_v13, %v2118_v50  ;;  %v3595_v15 = vpop.f32.mrb[25].mxu1 }
0x1531   :  { %v2192_v16 = vmax.f32 %v2189_v14, 0.0 }
0x1533   :  { %3605 = vmatmul.mubr.msk.f32.vlgmr.msra.gmra.mrb[20].mxu0 %vm265_vm1, %v2192_v16 }
0x1534   :  { %3626 = vmatprep.mubr.msk.f32.mxu0 %vm3997_vm5, %v3998_v33  ;;  %3802 = vmatpush3.bf16.msra.mxu0 %v3801_v43 }
0x1535   :  { %3803 = vmatprep.subr.bf16.mxu0 %v3996_v32 }
0x1538   :  { %3805 = vmatpush3.bf16.msra.mxu0 %v3804_v51 }
0x1539   :  { %3640 = vmatprep.subr.mxu0 %v3998_v33 }
0x1606   :  { %v2266_v18 = vpop.f32.mrb[20].mxu0 }
0x1607   :  { %v2267_v19 = vadd.f32 %v2266_v18, %v2196_v17  ;;  %v3606_v20 = vpop.f32.mrb[21].mxu0 }
0x1609   :  { %v2270_v22 = vmax.f32 %v2267_v19, 0.0 }
0x160b   :  { %v2271_v23 = vadd.f32 %v2270_v22, %v2114_v7 }
0x160d   :  { %v2272_v24 = vsel %vm610_vm10, %v2271_v23, 0.0 }
0x160e   :  { %2273 = vadd.xlane.f32.xlu0 %v2272_v24 }
0x169b   :  { %v2274_v25 = vpop.xlane.xlu0 %2273 }
0x169c   :  { %v2275_v26 = vmul.f32 0.03125, %v2274_v25 }
0x169e   :  { %v2276_v28 = vsub.f32 %v2271_v23, %v2275_v26 }
0x16a0   :  { %v2277_v29 = vmul.f32 %v2276_v28, %v2276_v28 }
0x16a2   :  { %v2278_v30 = vsel %vm610_vm10, %v2277_v29, 0.0 }
0x16a3   :  { %2279 = vadd.xlane.f32.xlu1 %v2278_v30 }
0x1730   :  { %v2280_v52 = vpop.xlane.xlu1 %2279 }
0x1731   :  { %v2281_v53 = vmul.f32 0.03125, %v2280_v52 }
0x1733   :  { %v2282_v54 = vadd.f32 1e-05, %v2281_v53 }
0x1735   :  { %3876 = vrsqrt.f32 %v2282_v54 }
0x173f   :  { %v3877_v56 = vpop.eup %3876 }
0x1740   :  { %v2284_v57 = vmul.f32 %v3877_v56, %v2276_v28 }
0x1742   :  { %v2289_v59 = vmul.f32 %v2288_v55, %v2284_v57 }
0x1744   :  { %v2294_v0 = vadd.f32 %v2293_v58, %v2289_v59  ;;  %v3233_v58 = vld [vmem:[%s4613_s9 + $0x60] sm:$0xff]  ;;  %v3234_v59 = vld [vmem:[%s4613_s9 + $0x68] sm:$0xff] }
0x1745   :  { %v3812_v60 = vpack.c.bf16 %v3234_v59, %v3233_v58  ;;  %v3059_v58 = vld [vmem:[%s4616_s12 + $0x18] sm:$0xff] }
0x1746   :  { %v2295_v47 = vmax.f32 %v2294_v0, 0.0  ;;  %v3236_v0 = vld [vmem:[%s4613_s9 + $0x78] sm:$0xff] }
0x1748   :  { %3616 = vmatmul.mubr.msk.f32.vlgmr.msra.gmra.mrb[26].mxu1 %vm265_vm1, %v2295_v47  ;;  %3627 = vmatmul.mubr.msk.f32.vlgmr.msra.gmra.mrb[22].mxu0 %vm265_vm1, %v2295_v47  ;;  %v3237_v47 = vld [vmem:[%s4614_s10 + $0x60] sm:$0xff] }
0x1749   :  { %3808 = vmatpush3.bf16.msra.mxu1 %v3807_v1  ;;  %3637 = vmatprep.mubr.msk.f32.mxu1 %vm3997_vm5, %v3998_v33  ;;  %v3816_v1 = vpack.c.bf16 %v3236_v0, %v3235_v61  ;;  %v3820_v38 = vpack.c.bf16 %v3238_v2, %v3237_v47 }
0x174a   :  { %3809 = vmatprep.subr.bf16.mxu1 %v3996_v32  ;;  %3641 = vmatpush3.msk.msra.mxu0 %vm370_vm2, %v3896_v4 }
0x174b   :  { %3642 = vmatprep.mubr.msk.f32.mxu0 %vm3997_vm5, %v3998_v33 }
0x174d   :  { %3811 = vmatpush3.bf16.msra.mxu1 %v3810_v3 }
0x181b   :  { %v2392_v5 = vpop.f32.mrb[26].mxu1  ;;  %v2462_v12 = vpop.f32.mrb[22].mxu0 }
0x181c   :  { %v3617_v6 = vpop.f32.mrb[27].mxu1  ;;  %v3628_v7 = vpop.f32.mrb[23].mxu0  ;;  %3638 = vmatmul.mubr.msk.f32.vlgmr.msra.gmra.mrb[28].mxu1 %vm265_vm1, %v2392_v5 }
0x181d   :  { %3652 = vmatprep.mubr.msk.f32.mxu1 %vm1142_vm12, %v4299_v34 }
0x18ef   :  { %v2535_v48 = vpop.f32.mrb[28].mxu1 }
0x18f0   :  { %v2539_v8 = vsel %vm1057_vm11, %v2535_v48, -inf  ;;  %v3639_v11 = vpop.f32.mrb[29].mxu1 }
0x18f1   :  { %v2540_v50 = vrot.slane %v2539_v8, 4 }
0x18f3   :  { %v2541_v13 = vmax.f32 %v2539_v8, %v2540_v50 }
0x18f5   :  { %v2542_v14 = vrot.slane %v2541_v13, 2 }
0x18f7   :  { %v2543_v15 = vmax.f32 %v2541_v13, %v2542_v14  ;;  %v2828_v14 = vrot.slane %v4518_v31, %v4227_v10 }
0x18f9   :  { %v2544_v16 = vrot.slane %v2543_v15, 1 }
0x18fb   :  { %v2545_v17 = vmax.f32 %v2543_v15, %v2544_v16 }
0x18fd   :  { %v2546_v18 = vsub.f32 %v2535_v48, %v2545_v17  ;;  %v2822_v48 = vrot.slane %v4518_v31, %v4224_v9  ;;  %v3239_v9 = vld [vmem:[%s4614_s10 + $0x70] sm:$0xff] }
0x18ff   :  { %v2547_v19 = vmul.f32 1.442695, %v2546_v18 }
0x1901   :  { %3878 = vpow2.f32 %v2547_v19  ;;  %v3240_v19 = vld [vmem:[%s4614_s10 + $0x78] sm:$0xff] }
0x1902   :  { %v3824_v10 = vpack.c.bf16 %v3240_v19, %v3239_v9 }
0x190b   :  { %v3879_v20 = vpop.eup %3878 }
0x190c   :  { %3643 = vmatmul.mubr.msk.f32.vlgmr.msra.gmra.mrb[24].mxu0 %vm347_vm4, %v3879_v20  ;;  %v2834_v20 = vrot.slane %v4518_v31, %v4244_v21 }
0x190d   :  { %3647 = vmatprep.mubr.msk.f32.mxu0 %vm1142_vm12, %v4299_v34 }
0x19df   :  { %v2618_v22 = vpop.f32.mrb[24].mxu0 }
0x19e0   :  { %v2622_v23 = vmul.f32 %v2618_v22, %v2462_v12  ;;  %v3644_v24 = vpop.f32.mrb[25].mxu0  ;;  %3650 = vmatprep.subr.msk.mxu1 %vm1149_vm13, %v2618_v22 }
0x19e1   :  { %3651 = vmatpush3.msk.msra.mxu1 %vm1149_vm13, %v2618_v22 }
0x19e2   :  { %3645 = vmatprep.subr.msk.mxu0 %vm1149_vm13, %v2622_v23  ;;  %3653 = vmatmul.mubr.msk.f32.vlgmr.msra.gmra.mrb[30].mxu1 %vm1142_vm12, %v4308_v36 }
0x19e3   :  { %3646 = vmatpush3.msk.msra.mxu0 %vm1149_vm13, %v2622_v23  ;;  %3821 = vmatprep.subr.bf16.mxu1 %v3820_v38 }
0x19e4   :  { %3648 = vmatmul.mubr.msk.f32.vlgmr.msra.gmra.mrb[26].mxu0 %vm1142_vm12, %v4308_v36  ;;  %3813 = vmatprep.subr.bf16.mxu0 %v3812_v60 }
0x19e5   :  { %3815 = vmatpush3.bf16.msra.mxu0 %v3812_v60  ;;  %3823 = vmatpush3.bf16.msra.mxu1 %v3820_v38  ;;  %v3036_v38 = vrot.slane %v4518_v31, %v4263_v62 }
0x19e6   :  { %3817 = vmatprep.subr.bf16.mxu0 %v3816_v1  ;;  %3825 = vmatprep.subr.bf16.mxu1 %v3824_v10 }
0x19e9   :  { %3819 = vmatpush3.bf16.msra.mxu0 %v3816_v1  ;;  %3827 = vmatpush3.bf16.msra.mxu1 %v3824_v10 }
0x19ea   :  { %3828 = vmatprep.subr.bf16.mxu0 %v3996_v32 }
0x1ab5   :  { %v3654_v25 = vpop.f32.mrb[30].mxu1 }
0x1ab6   :  { %vm2780_vm2 = vcmp.gt.f32.partialorder %v3654_v25, 0.0  ;;  %v2770_v34 = vpop.f32.mrb[31].mxu1 }
0x1ab7   :  { %v2782_v26 = vsel %vm2780_vm2, %v3654_v25, 1.0  ;;  %vm2779_vm4 = vcmp.gt.f32.partialorder %v2770_v34, 0.0  ;;  %v3649_v28 = vpop.f32.mrb[26].mxu0 }
0x1ab8   :  { %3880 = vrcp.f32 %v2782_v26  ;;  %v2781_v29 = vsel %vm2779_vm4, %v2770_v34, 1.0  ;;  %v2692_v30 = vpop.f32.mrb[27].mxu0  ;;  %v2921_v26 = vrot.slane %v4518_v31, %v4252_v27 }
0x1ab9   :  { %3882 = vrcp.f32 %v2781_v29 }
0x1ac2   :  { %v3881_v39 = vpop.eup %3880 }
0x1ac3   :  { %v3883_v36 = vpop.eup %3882  ;;  %v2786_v37 = vmul.f32 %v3881_v39, %v3649_v28 }
0x1ac4   :  { %v2785_v40 = vmul.f32 %v3883_v36, %v2692_v30 }
0x1ac5   :  { %v2792_v42 = vadd.f32 %v2790_v35, %v2786_v37 }
0x1ac6   :  { %v2791_v41 = vadd.f32 %v2790_v35, %v2785_v40 }
0x1ac7   :  { %v2796_v43 = vsel %vm1323_vm0, %v2792_v42, 0.0 }
0x1ac8   :  { %2797 = vadd.xlane.f32.xlu1 %v2796_v43  ;;  %v2793_v44 = vsel %vm265_vm1, %v2791_v41, 0.0 }
0x1ac9   :  { %2794 = vadd.xlane.f32.xlu0 %v2793_v44 }
0x1b55   :  { %v2798_v45 = vpop.xlane.xlu1 %2797 }
0x1b56   :  { %v2800_v46 = vmul.f32 0.03125, %v2798_v45  ;;  %v2795_v51 = vpop.xlane.xlu0 %2794 }
0x1b57   :  { %v2799_v52 = vmul.f32 0.03125, %v2795_v51 }
0x1b58   :  { %v2802_v53 = vsub.f32 %v2792_v42, %v2800_v46 }
0x1b59   :  { %v2801_v54 = vsub.f32 %v2791_v41, %v2799_v52 }
0x1b5a   :  { %v2804_v55 = vmul.f32 %v2802_v53, %v2802_v53 }
0x1b5b   :  { %v2803_v49 = vmul.f32 %v2801_v54, %v2801_v54 }
0x1b5c   :  { %v2808_v56 = vsel %vm1323_vm0, %v2804_v55, 0.0  ;;  %v3056_v55 = vld [vmem:[%s4616_s12] sm:$0xff] }
0x1b5d   :  { %2809 = vadd.xlane.f32.xlu1 %v2808_v56  ;;  %v2805_v57 = vsel %vm265_vm1, %v2803_v49, 0.0  ;;  %v3057_v49 = vld [vmem:[%s4616_s12 + $0x8] sm:$0xff]  ;;  %v3058_v56 = vld [vmem:[%s4616_s12 + $0x10] sm:$0xff] }
0x1b5e   :  { %2806 = vadd.xlane.f32.xlu0 %v2805_v57  ;;  %v3829_v57 = vpack.c.bf16 %v3057_v49, %v3056_v55  ;;  %v3832_v59 = vpack.c.bf16 %v3059_v58, %v3058_v56 }
0x1bea   :  { %v2810_v3 = vpop.xlane.xlu1 %2809 }
0x1beb   :  { %v2812_v4 = vmul.f32 0.03125, %v2810_v3  ;;  %v2807_v5 = vpop.xlane.xlu0 %2806 }
0x1bec   :  { %v2811_v12 = vmul.f32 0.03125, %v2807_v5  ;;  %v3042_v5 = vrot.slane %v4518_v31, %v4266_v63  ;;  %v3060_v63 = vld [vmem:[%s4617_s13] sm:$0x1] }
0x1bed   :  { %v2814_v6 = vadd.f32 1e-05, %v2812_v4 }
0x1bee   :  { %v2813_v7 = vadd.f32 1e-05, %v2811_v12 }
0x1bef   :  { %3884 = vrsqrt.f32 %v2814_v6 }
0x1bf0   :  { %3886 = vrsqrt.f32 %v2813_v7 }
0x1bf9   :  { %v3885_v8 = vpop.eup %3884 }
0x1bfa   :  { %v3887_v11 = vpop.eup %3886  ;;  %v2818_v50 = vmul.f32 %v3885_v8, %v2802_v53 }
0x1bfb   :  { %v2817_v13 = vmul.f32 %v3887_v11, %v2801_v54 }
0x1bfc   :  { %v2824_v15 = vmul.f32 %v2822_v48, %v2818_v50 }
0x1bfd   :  { %v2823_v16 = vmul.f32 %v2822_v48, %v2817_v13 }
0x1bfe   :  { %v2830_v18 = vadd.f32 %v2828_v14, %v2824_v15 }
0x1bff   :  { %v2829_v17 = vadd.f32 %v2828_v14, %v2823_v16 }
0x1c01   :  { %3663 = vmatprep.mubr.msk.f32.mxu0 %vm265_vm1, %v2829_v17 }
0x1c02   :  { %3664 = vmatmul.mubr.msk.f32.vlgmr.msra.gmra.mrb[28].mxu0 %vm265_vm1, %v2830_v18 }
0x1c03   :  { %3685 = vmatprep.mubr.msk.f32.mxu0 %vm3997_vm5, %v3998_v33  ;;  %3830 = vmatpush3.bf16.msra.mxu0 %v3829_v57  ;;  %vm3140_vm5 = vcmask 24576  }
0x1c04   :  { %3831 = vmatprep.subr.bf16.mxu0 %v3996_v32 }
0x1c07   :  { %3833 = vmatpush3.bf16.msra.mxu0 %v3832_v59 }
0x1cd5   :  { %v3665_v22 = vpop.f32.mrb[28].mxu0 }
0x1cd6   :  { %v2913_v23 = vadd.f32 %v3665_v22, %v2834_v20  ;;  %v2907_v24 = vpop.f32.mrb[29].mxu0 }
0x1cd7   :  { %v2908_v25 = vadd.f32 %v2907_v24, %v2834_v20 }
0x1cd8   :  { %v2917_v33 = vmax.f32 %v2913_v23, 0.0 }
0x1cd9   :  { %v2916_v34 = vmax.f32 %v2908_v25, 0.0 }
0x1cdb   :  { %3674 = vmatprep.mubr.msk.f32.mxu1 %vm265_vm1, %v2916_v34 }
0x1cdc   :  { %3675 = vmatmul.mubr.msk.f32.vlgmr.msra.gmra.mrb[32].mxu1 %vm265_vm1, %v2917_v33 }
0x1daf   :  { %v3676_v28 = vpop.f32.mrb[32].mxu1 }
0x1db0   :  { %v3000_v29 = vadd.f32 %v3676_v28, %v2921_v26  ;;  %v2994_v30 = vpop.f32.mrb[33].mxu1 }
0x1db1   :  { %v2995_v35 = vadd.f32 %v2994_v30, %v2921_v26 }
0x1db2   :  { %v3004_v39 = vmax.f32 %v3000_v29, 0.0 }
0x1db3   :  { %v3003_v36 = vmax.f32 %v2995_v35, 0.0 }
0x1db4   :  { %v3006_v21 = vadd.f32 %v3004_v39, %v2830_v18 }
0x1db5   :  { %v3005_v37 = vadd.f32 %v3003_v36, %v2829_v17 }
0x1db6   :  { %v3010_v40 = vsel %vm1323_vm0, %v3006_v21, 0.0 }
0x1db7   :  { %3011 = vadd.xlane.f32.xlu1 %v3010_v40  ;;  %v3007_v42 = vsel %vm265_vm1, %v3005_v37, 0.0 }
0x1db8   :  { %3008 = vadd.xlane.f32.xlu0 %v3007_v42 }
0x1e44   :  { %v3012_v41 = vpop.xlane.xlu1 %3011 }
0x1e45   :  { %v3014_v43 = vmul.f32 0.03125, %v3012_v41  ;;  %v3009_v44 = vpop.xlane.xlu0 %3008 }
0x1e46   :  { %v3013_v45 = vmul.f32 0.03125, %v3009_v44 }
0x1e47   :  { %v3016_v46 = vsub.f32 %v3006_v21, %v3014_v43 }
0x1e48   :  { %v3015_v27 = vsub.f32 %v3005_v37, %v3013_v45 }
0x1e49   :  { %v3018_v51 = vmul.f32 %v3016_v46, %v3016_v46 }
0x1e4a   :  { %v3017_v52 = vmul.f32 %v3015_v27, %v3015_v27 }
0x1e4b   :  { %v3022_v53 = vsel %vm1323_vm0, %v3018_v51, 0.0 }
0x1e4c   :  { %3023 = vadd.xlane.f32.xlu1 %v3022_v53  ;;  %v3019_v54 = vsel %vm265_vm1, %v3017_v52, 0.0 }
0x1e4d   :  { %3020 = vadd.xlane.f32.xlu0 %v3019_v54 }
0x1ed9   :  { %v3024_v60 = vpop.xlane.xlu1 %3023 }
0x1eda   :  { %v3026_v61 = vmul.f32 0.03125, %v3024_v60  ;;  %v3021_v0 = vpop.xlane.xlu0 %3020 }
0x1edb   :  { %v3025_v1 = vmul.f32 0.03125, %v3021_v0 }
0x1edc   :  { %v3028_v47 = vadd.f32 1e-05, %v3026_v61 }
0x1edd   :  { %v3027_v2 = vadd.f32 1e-05, %v3025_v1 }
0x1ede   :  { %3888 = vrsqrt.f32 %v3028_v47 }
0x1edf   :  { %3890 = vrsqrt.f32 %v3027_v2 }
0x1ee8   :  { %v3889_v3 = vpop.eup %3888 }
0x1ee9   :  { %v3891_v4 = vpop.eup %3890  ;;  %v3032_v12 = vmul.f32 %v3889_v3, %v3016_v46 }
0x1eea   :  { %v3031_v6 = vmul.f32 %v3891_v4, %v3015_v27 }
0x1eeb   :  { %v3038_v32 = vmul.f32 %v3036_v38, %v3032_v12 }
0x1eec   :  { %v3037_v7 = vmul.f32 %v3036_v38, %v3031_v6 }
0x1eed   :  { %v3044_v48 = vadd.f32 %v3042_v5, %v3038_v32 }
0x1eee   :  { %v3043_v8 = vadd.f32 %v3042_v5, %v3037_v7 }
0x1eef   :  { %v3046_v11 = vmax.f32 %v3044_v48, 0.0 }
0x1ef0   :  { %v3045_v50 = vmax.f32 %v3043_v8, 0.0 }
0x1ef1   :  { %v3048_v13 = vsel %vm1323_vm0, %v3046_v11, -inf }
0x1ef2   :  { %v3047_v14 = vsel %vm265_vm1, %v3045_v50, -inf }
0x1ef3   :  { %v3049_v15 = vmax.f32 %v3047_v14, %v3048_v13 }
0x1ef5   :  { %v3050_v16 = vrot.slane %v3049_v15, 4 }
0x1ef7   :  { %v3051_v62 = vmax.f32 %v3049_v15, %v3050_v16 }
0x1ef9   :  { %v3052_v17 = vrot.slane %v3051_v62, 2 }
0x1efb   :  { %v3053_v18 = vmax.f32 %v3051_v62, %v3052_v17 }
0x1efd   :  { %v3054_v9 = vrot.slane %v3053_v18, 1 }
0x1eff   :  { %v3055_v19 = vmax.f32 %v3053_v18, %v3054_v9 }
0x1f01   :  { %3686 = vmatmul.mubr.msk.f32.vlgmr.msra.gmra.mrb[30].mxu0 %vm265_vm1, %v3055_v19 }
0x1fd4   :  { %v3130_v31 = vpop.f32.mrb[30].mxu0 }
0x1fd5   :  { %v3131_v10 = vadd.f32 %v3130_v31, %v3060_v63  ;;  %v3687_v20 = vpop.f32.mrb[31].mxu0 }
0x1fd7   :  { %v3134_v22 = vsub.f32 0.0, %v3131_v10 }
0x1fd9   :  { %v3135_v23 = vmul.f32 1.442695, %v3134_v22 }
0x1fdb   :  { %3892 = vpow2.f32 %v3135_v23 }
0x1fe5   :  { %v3893_v24 = vpop.eup %3892 }
0x1fe6   :  { %v3137_v25 = vadd.f32 1.0, %v3893_v24 }
0x1fe8   :  { %3894 = vrcp.f32 %v3137_v25 }
0x1ff2   :  { %v3895_v34 = vpop.eup %3894 }
0x1ff3   :  { %3141 = vst.msk [vmem:[#allocation8] sm:$0x1] %vm3140_vm5, %v3895_v34 }
0x1ff4   :  { %3974 = shalt.err (!%p3971_p0)
}
0x1ff5   :  { %s3975_s23 = scalar_lea.hbm %s4618_s14, 16 }
0x1ff6   :  { %p3976_p1 = scmp.ne.s32.totalorder %s4618_s14, %s3975_s23  ;;  %p3979_p2 = scmp.lt.u32.totalorder %s3975_s23, %s4618_s14 }
0x1ff8   :  { %p3981_p3 = pnand %p3979_p2, %p3976_p1 }
0x1ffa   :  { %3984 = shalt.err (!%p3981_p3)
}
0x1ffb   :  { %3151 = dma.vmem_to_hbm [thread:$0]  %s3149_s8, 16, %s4618_s14, [#allocation4]  }
0x1ffc   :  { %3989 = dma.done.wait [#allocation4], 16  }
0x1ffd   :  { %3990 = vsyncadd [#allocation4], 4294967280 }
0x1ffe   :  { %3155 = vsyncpa [#allocation3], 1 }
0x1fff   :  { %3156 = vsyncpa [#allocation6], 1 }
0x2000   :  { %3157 = vsyncpa [#allocation4], 1 }

</bundles_post_ra>
